<compile_context>
chip_gen: v7x
topology: tpu7x:2x2x1
jax: 0.10.0
libtpu: 0.0.40
codegen_flags: <defaults>
</compile_context>

<pallas_src>
import math
import jax
import jax.numpy as jnp
from jax.experimental import pallas as pl
from jax.experimental.pallas import tpu as pltpu


# ------------------------- fused whole-model kernel -------------------------

def _make_fused_forward(T, B, D, H, C, L):
    """Builds a single pallas_call running the full forward pass.

    Kernel inputs (all resident in VMEM, full-array blocks):
      x_flat                     : (T*B, D)   time-major flattened input
      per layer l in [0, L):     w_ih_t (D_in, 4H), w_hh_t (H, 4H), b (1, 4H)
                                 with gate column order (i, f, o, g)
      head:                      w1_t (H, H1), b1 (1, H1), w2_t (H1, C), b2 (1, C)
    Outputs: logits (B, C), h_n (L, B, H), c_n (L, B, H)  -- written once at end.
    """
    TB = T * B

    def kernel(x_ref,
               wih0_ref, whh0_ref, b0_ref,
               wih1_ref, whh1_ref, b1_ref,
               wih2_ref, whh2_ref, b2_ref,
               w1_ref, fb1_ref, w2_ref, fb2_ref,
               logits_ref, hn_ref, cn_ref,
               seq_scr):
        wih_refs = (wih0_ref, wih1_ref, wih2_ref)
        whh_refs = (whh0_ref, whh1_ref, whh2_ref)
        b_refs = (b0_ref, b1_ref, b2_ref)

        layer_in = x_ref[...]                       # (T*B, D_in), time-major
        h = jnp.zeros((B, H), jnp.float32)
        c = jnp.zeros((B, H), jnp.float32)

        for l in range(L):
            # Hoisted input projection: one wide MXU matmul per layer.
            gx = (jnp.dot(layer_in, wih_refs[l][...],
                          preferred_element_type=jnp.float32)
                  + b_refs[l][...])                 # (T*B, 4H), gates (i,f,o,g)
            whh = whh_refs[l][...]                  # (H, 4H)

            h = jnp.zeros((B, H), jnp.float32)
            c = jnp.zeros((B, H), jnp.float32)
            for t in range(T):                      # fully unrolled recurrence
                gates = gx[t * B:(t + 1) * B, :] + jnp.dot(
                    h, whh, preferred_element_type=jnp.float32)    # (B, 4H)
                ifo = jax.nn.sigmoid(gates[:, :3 * H])   # one wide sigmoid (i,f,o)
                g = jnp.tanh(gates[:, 3 * H:])           # cell candidate
                i_g = ifo[:, 0 * H:1 * H]
                f_g = ifo[:, 1 * H:2 * H]
                o_g = ifo[:, 2 * H:3 * H]
                c = f_g * c + i_g * g
                h = o_g * jnp.tanh(c)
                if l < L - 1:
                    # stage hidden sequence in VMEM scratch for the next layer
                    seq_scr[t * B:(t + 1) * B, :] = h

            hn_ref[l] = h                           # final-step state, layer l
            cn_ref[l] = c
            if l < L - 1:
                layer_in = seq_scr[...]             # (T*B, H)

        # FC head on last timestep of top layer.  F.dropout(p=0) is identity.
        h1 = jnp.dot(h, w1_ref[...],
                     preferred_element_type=jnp.float32) + fb1_ref[...]
        h1 = jnp.maximum(h1, 0.0)                   # ReLU
        logits_ref[...] = (jnp.dot(h1, w2_ref[...],
                                   preferred_element_type=jnp.float32)
                           + fb2_ref[...])

    out_shape = (
        jax.ShapeDtypeStruct((B, C), jnp.float32),      # logits
        jax.ShapeDtypeStruct((L, B, H), jnp.float32),   # h_n
        jax.ShapeDtypeStruct((L, B, H), jnp.float32),   # c_n
    )
    return pl.pallas_call(
        kernel,
        out_shape=out_shape,
        scratch_shapes=[pltpu.VMEM((TB, H), jnp.float32)],
    )


# --------------------------------- the module ---------------------------------

def _reorder_gates_cols(w_t, H):
    """Permute gate columns from PyTorch (i,f,g,o) to kernel order (i,f,o,g)."""
    return jnp.concatenate(
        [w_t[:, :2 * H], w_t[:, 3 * H:4 * H], w_t[:, 2 * H:3 * H]], axis=1)


class RNNPallas:
    def __init__(self, input_size, hidden_size=32, num_layers=3,
                 num_classes=48, hidden_s1=32, drop_p=0.0, key=None):
        self.input_size = input_size
        self.hidden_size = hidden_size
        self.num_layers = num_layers
        self.num_classes = num_classes
        self.hidden1 = hidden_s1
        self.drop_p = drop_p

        if key is None:
            key = jax.random.PRNGKey(0)
        H = hidden_size
        k_lstm = 1.0 / math.sqrt(H)

        # PyTorch-ordered (i,f,g,o) transposed weights (kept for the reference
        # check), and kernel-ordered (i,f,o,g) copies used by the Pallas kernel.
        self.w_ih_t_ref, self.w_hh_t_ref, self.b_ref = [], [], []
        self.w_ih_t, self.w_hh_t, self.b = [], [], []
        for l in range(num_layers):
            d_in = input_size if l == 0 else H
            key, k1, k2, k3, k4 = jax.random.split(key, 5)
            w_ih = jax.random.uniform(k1, (4 * H, d_in), jnp.float32, -k_lstm, k_lstm)
            w_hh = jax.random.uniform(k2, (4 * H, H), jnp.float32, -k_lstm, k_lstm)
            b_ih = jax.random.uniform(k3, (4 * H,), jnp.float32, -k_lstm, k_lstm)
            b_hh = jax.random.uniform(k4, (4 * H,), jnp.float32, -k_lstm, k_lstm)
            w_ih_t = jnp.transpose(w_ih)                     # (d_in, 4H)
            w_hh_t = jnp.transpose(w_hh)                     # (H, 4H)
            bias = (b_ih + b_hh)[None, :]                    # (1, 4H)
            self.w_ih_t_ref.append(w_ih_t)
            self.w_hh_t_ref.append(w_hh_t)
            self.b_ref.append(bias)
            self.w_ih_t.append(_reorder_gates_cols(w_ih_t, H))
            self.w_hh_t.append(_reorder_gates_cols(w_hh_t, H))
            self.b.append(_reorder_gates_cols(bias, H))

        k_fc1 = 1.0 / math.sqrt(H)
        k_fc2 = 1.0 / math.sqrt(hidden_s1)
        key, k1, k2, k3, k4 = jax.random.split(key, 5)
        self.w1_t = jnp.transpose(
            jax.random.uniform(k1, (hidden_s1, H), jnp.float32, -k_fc1, k_fc1))
        self.b1 = jax.random.uniform(k2, (hidden_s1,), jnp.float32,
                                     -k_fc1, k_fc1)[None, :]
        self.w2_t = jnp.transpose(
            jax.random.uniform(k3, (num_classes, hidden_s1), jnp.float32,
                               -k_fc2, k_fc2))
        self.b2 = jax.random.uniform(k4, (num_classes,), jnp.float32,
                                     -k_fc2, k_fc2)[None, :]

        self._fused = {}   # cache of compiled fused forwards keyed by (T, B, D)

    def __call__(self, x, hidden=None):
        # NOTE: reference forward calls `self.gru.flatten_parameters()` which is
        # a bug (no self.gru) / math no-op -- intentionally ignored here.
        # TODO(synk): support a user-provided initial `hidden`; the reference
        # example path uses hidden=None (zeros), which is what the kernel does.
        B, T, D = x.shape
        key = (T, B, D)
        if key not in self._fused:
            self._fused[key] = _make_fused_forward(
                T, B, D, self.hidden_size, self.num_classes, self.num_layers)
        fused = self._fused[key]

        # time-major flatten outside the kernel: (B,T,D) -> (T,B,D) -> (T*B,D)
        x_flat = jnp.transpose(x, (1, 0, 2)).astype(jnp.float32).reshape(T * B, D)

        logits, h_n, c_n = fused(
            x_flat,
            self.w_ih_t[0], self.w_hh_t[0], self.b[0],
            self.w_ih_t[1], self.w_hh_t[1], self.b[1],
            self.w_ih_t[2], self.w_hh_t[2], self.b[2],
            self.w1_t, self.b1, self.w2_t, self.b2)
        return logits, (h_n, c_n)


# ------------------------------ pure-JAX reference ------------------------------

def _reference(model, x):
    """Uses the ORIGINAL PyTorch-ordered (i,f,g,o) weights, validating both the
    kernel math and the host-side gate-column reorder."""
    x = jnp.transpose(x, (1, 0, 2)).astype(jnp.float32)  # (T, B, D)
    B = x.shape[1]
    H = model.hidden_size
    cur = x
    hs, cs = [], []
    for l in range(model.num_layers):
        def step(carry, x_t, l=l):
            h, c = carry
            gates = x_t @ model.w_ih_t_ref[l] + h @ model.w_hh_t_ref[l] + model.b_ref[l]
            i = jax.nn.sigmoid(gates[:, 0 * H:1 * H])
            f = jax.nn.sigmoid(gates[:, 1 * H:2 * H])
            g = jnp.tanh(gates[:, 2 * H:3 * H])
            o = jax.nn.sigmoid(gates[:, 3 * H:4 * H])
            c = f * c + i * g
            h = o * jnp.tanh(c)
            return (h, c), h
        init = (jnp.zeros((B, H), jnp.float32), jnp.zeros((B, H), jnp.float32))
        (hT, cT), cur = jax.lax.scan(step, init, cur)
        hs.append(hT)
        cs.append(cT)
    last = cur[-1]
    h1 = jnp.maximum(last @ model.w1_t + model.b1, 0.0)
    logits = h1 @ model.w2_t + model.b2
    return logits, (jnp.stack(hs, 0), jnp.stack(cs, 0))


if __name__ == "__main__":
    B, T, D = 2, 8, 16          # batch=2, seq=8, input_size=16
    H, H1, C = 32, 32, 48       # hidden=32, hidden_s1=32, num_classes=48

    key = jax.random.PRNGKey(0)
    kx, kp = jax.random.split(key)
    x = jax.random.normal(kx, (B, T, D), jnp.float32)

    model = RNNPallas(input_size=D, hidden_size=H, num_layers=3,
                      num_classes=C, hidden_s1=H1, drop_p=0.0, key=kp)

    logits, (h_n, c_n) = model(x, hidden=None)
    jax.block_until_ready((logits, h_n, c_n))

    ref_logits, (ref_h, ref_c) = _reference(model, x)
    assert logits.shape == (B, C)
    assert h_n.shape == (3, B, H) and c_n.shape == (3, B, H)
    assert jnp.allclose(logits, ref_logits, rtol=1e-3, atol=1e-3)
    assert jnp.allclose(h_n, ref_h, rtol=1e-3, atol=1e-3)
    assert jnp.allclose(c_n, ref_c, rtol=1e-3, atol=1e-3)

    print("KERNEL_OK")
</pallas_src>

<mosaic_0001>
module attributes {stable_mosaic.version = 11 : i64} {
  func.func @kernel(%arg0: memref<16x16xf32, #tpu.memory_space<vmem>>, %arg1: memref<16x128xf32, #tpu.memory_space<vmem>>, %arg2: memref<32x128xf32, #tpu.memory_space<vmem>>, %arg3: memref<1x128xf32, #tpu.memory_space<vmem>>, %arg4: memref<32x128xf32, #tpu.memory_space<vmem>>, %arg5: memref<32x128xf32, #tpu.memory_space<vmem>>, %arg6: memref<1x128xf32, #tpu.memory_space<vmem>>, %arg7: memref<32x128xf32, #tpu.memory_space<vmem>>, %arg8: memref<32x128xf32, #tpu.memory_space<vmem>>, %arg9: memref<1x128xf32, #tpu.memory_space<vmem>>, %arg10: memref<32x32xf32, #tpu.memory_space<vmem>>, %arg11: memref<1x32xf32, #tpu.memory_space<vmem>>, %arg12: memref<32x48xf32, #tpu.memory_space<vmem>>, %arg13: memref<1x48xf32, #tpu.memory_space<vmem>>, %arg14: memref<2x48xf32, #tpu.memory_space<vmem>>, %arg15: memref<3x2x32xf32, #tpu.memory_space<vmem>>, %arg16: memref<3x2x32xf32, #tpu.memory_space<vmem>>, %arg17: memref<16x32xf32, #tpu.memory_space<vmem>>) attributes {dimension_semantics = [], scalar_prefetch = 0 : i64, scratch_operands = 1 : i64, tpu.core_type = #tpu.core_type<tc>} {
    %c0 = arith.constant 0 : index
    %c0_0 = arith.constant 0 : index
    %0 = vector.load %arg0[%c0, %c0_0] : memref<16x16xf32, #tpu.memory_space<vmem>>, vector<16x16xf32>
    %c0_1 = arith.constant 0 : index
    %c0_2 = arith.constant 0 : index
    %1 = vector.load %arg1[%c0_1, %c0_2] : memref<16x128xf32, #tpu.memory_space<vmem>>, vector<16x128xf32>
    %cst = arith.constant dense<0.000000e+00> : vector<16x128xf32>
    %2 = tpu.matmul %0, %1, %cst {dimension_numbers = #tpu.dot_dimension_numbers<[1], [0], [0], [1], [0, 0, 1, 1], [], []>} : vector<16x16xf32>, vector<16x128xf32>, vector<16x128xf32> -> vector<16x128xf32>
    %c0_3 = arith.constant 0 : index
    %c0_4 = arith.constant 0 : index
    %3 = vector.load %arg3[%c0_3, %c0_4] : memref<1x128xf32, #tpu.memory_space<vmem>>, vector<1x128xf32>
    %4 = vector.broadcast %3 : vector<1x128xf32> to vector<16x128xf32>
    %5 = arith.addf %2, %4 : vector<16x128xf32>
    %c0_5 = arith.constant 0 : index
    %c0_6 = arith.constant 0 : index
    %6 = vector.load %arg2[%c0_5, %c0_6] : memref<32x128xf32, #tpu.memory_space<vmem>>, vector<32x128xf32>
    %cst_7 = arith.constant 0.000000e+00 : f32
    %7 = vector.broadcast %cst_7 : f32 to vector<2x32xf32>
    %cst_8 = arith.constant 0.000000e+00 : f32
    %8 = vector.broadcast %cst_8 : f32 to vector<2x32xf32>
    %9 = vector.extract_strided_slice %5 {offsets = [0, 0], sizes = [2, 128], strides = [1, 1]} : vector<16x128xf32> to vector<2x128xf32>
    %cst_9 = arith.constant dense<0.000000e+00> : vector<2x128xf32>
    %10 = tpu.matmul %7, %6, %cst_9 {dimension_numbers = #tpu.dot_dimension_numbers<[1], [0], [0], [1], [0, 0, 1, 1], [], []>} : vector<2x32xf32>, vector<32x128xf32>, vector<2x128xf32> -> vector<2x128xf32>
    %11 = arith.addf %9, %10 : vector<2x128xf32>
    %12 = vector.extract_strided_slice %11 {offsets = [0, 0], sizes = [2, 96], strides = [1, 1]} : vector<2x128xf32> to vector<2x96xf32>
    %13 = arith.negf %12 : vector<2x96xf32>
    %14 = math.exp %13 : vector<2x96xf32>
    %cst_10 = arith.constant 1.000000e+00 : f32
    %15 = vector.broadcast %cst_10 : f32 to vector<2x96xf32>
    %16 = arith.addf %15, %14 : vector<2x96xf32>
    %17 = arith.divf %15, %16 : vector<2x96xf32>
    %18 = vector.extract_strided_slice %11 {offsets = [0, 96], sizes = [2, 32], strides = [1, 1]} : vector<2x128xf32> to vector<2x32xf32>
    %19 = math.tanh %18 : vector<2x32xf32>
    %20 = vector.extract_strided_slice %17 {offsets = [0, 0], sizes = [2, 32], strides = [1, 1]} : vector<2x96xf32> to vector<2x32xf32>
    %21 = vector.extract_strided_slice %17 {offsets = [0, 32], sizes = [2, 32], strides = [1, 1]} : vector<2x96xf32> to vector<2x32xf32>
    %22 = vector.extract_strided_slice %17 {offsets = [0, 64], sizes = [2, 32], strides = [1, 1]} : vector<2x96xf32> to vector<2x32xf32>
    %23 = arith.mulf %21, %8 : vector<2x32xf32>
    %24 = arith.mulf %20, %19 : vector<2x32xf32>
    %25 = arith.addf %23, %24 : vector<2x32xf32>
    %26 = math.tanh %25 : vector<2x32xf32>
    %27 = arith.mulf %22, %26 : vector<2x32xf32>
    %c0_11 = arith.constant 0 : index
    %c0_12 = arith.constant 0 : index
    %28 = vector.load %arg17[%c0_11, %c0_12] : memref<16x32xf32, #tpu.memory_space<vmem>>, vector<2x32xf32>
    tpu.vector_store %arg17[%c0_11, %c0_12], %27 {strides = array<i32>} : memref<16x32xf32, #tpu.memory_space<vmem>>, vector<2x32xf32>,
    %29 = vector.extract_strided_slice %5 {offsets = [2, 0], sizes = [2, 128], strides = [1, 1]} : vector<16x128xf32> to vector<2x128xf32>
    %cst_13 = arith.constant dense<0.000000e+00> : vector<2x128xf32>
    %30 = tpu.matmul %27, %6, %cst_13 {dimension_numbers = #tpu.dot_dimension_numbers<[1], [0], [0], [1], [0, 0, 1, 1], [], []>} : vector<2x32xf32>, vector<32x128xf32>, vector<2x128xf32> -> vector<2x128xf32>
    %31 = arith.addf %29, %30 : vector<2x128xf32>
    %32 = vector.extract_strided_slice %31 {offsets = [0, 0], sizes = [2, 96], strides = [1, 1]} : vector<2x128xf32> to vector<2x96xf32>
    %33 = arith.negf %32 : vector<2x96xf32>
    %34 = math.exp %33 : vector<2x96xf32>
    %cst_14 = arith.constant 1.000000e+00 : f32
    %35 = vector.broadcast %cst_14 : f32 to vector<2x96xf32>
    %36 = arith.addf %35, %34 : vector<2x96xf32>
    %37 = arith.divf %35, %36 : vector<2x96xf32>
    %38 = vector.extract_strided_slice %31 {offsets = [0, 96], sizes = [2, 32], strides = [1, 1]} : vector<2x128xf32> to vector<2x32xf32>
    %39 = math.tanh %38 : vector<2x32xf32>
    %40 = vector.extract_strided_slice %37 {offsets = [0, 0], sizes = [2, 32], strides = [1, 1]} : vector<2x96xf32> to vector<2x32xf32>
    %41 = vector.extract_strided_slice %37 {offsets = [0, 32], sizes = [2, 32], strides = [1, 1]} : vector<2x96xf32> to vector<2x32xf32>
    %42 = vector.extract_strided_slice %37 {offsets = [0, 64], sizes = [2, 32], strides = [1, 1]} : vector<2x96xf32> to vector<2x32xf32>
    %43 = arith.mulf %41, %25 : vector<2x32xf32>
    %44 = arith.mulf %40, %39 : vector<2x32xf32>
    %45 = arith.addf %43, %44 : vector<2x32xf32>
    %46 = math.tanh %45 : vector<2x32xf32>
    %47 = arith.mulf %42, %46 : vector<2x32xf32>
    %c2 = arith.constant 2 : index
    %c0_15 = arith.constant 0 : index
    %48 = vector.load %arg17[%c2, %c0_15] : memref<16x32xf32, #tpu.memory_space<vmem>>, vector<2x32xf32>
    tpu.vector_store %arg17[%c2, %c0_15], %47 {strides = array<i32>} : memref<16x32xf32, #tpu.memory_space<vmem>>, vector<2x32xf32>,
    %49 = vector.extract_strided_slice %5 {offsets = [4, 0], sizes = [2, 128], strides = [1, 1]} : vector<16x128xf32> to vector<2x128xf32>
    %cst_16 = arith.constant dense<0.000000e+00> : vector<2x128xf32>
    %50 = tpu.matmul %47, %6, %cst_16 {dimension_numbers = #tpu.dot_dimension_numbers<[1], [0], [0], [1], [0, 0, 1, 1], [], []>} : vector<2x32xf32>, vector<32x128xf32>, vector<2x128xf32> -> vector<2x128xf32>
    %51 = arith.addf %49, %50 : vector<2x128xf32>
    %52 = vector.extract_strided_slice %51 {offsets = [0, 0], sizes = [2, 96], strides = [1, 1]} : vector<2x128xf32> to vector<2x96xf32>
    %53 = arith.negf %52 : vector<2x96xf32>
    %54 = math.exp %53 : vector<2x96xf32>
    %cst_17 = arith.constant 1.000000e+00 : f32
    %55 = vector.broadcast %cst_17 : f32 to vector<2x96xf32>
    %56 = arith.addf %55, %54 : vector<2x96xf32>
    %57 = arith.divf %55, %56 : vector<2x96xf32>
    %58 = vector.extract_strided_slice %51 {offsets = [0, 96], sizes = [2, 32], strides = [1, 1]} : vector<2x128xf32> to vector<2x32xf32>
    %59 = math.tanh %58 : vector<2x32xf32>
    %60 = vector.extract_strided_slice %57 {offsets = [0, 0], sizes = [2, 32], strides = [1, 1]} : vector<2x96xf32> to vector<2x32xf32>
    %61 = vector.extract_strided_slice %57 {offsets = [0, 32], sizes = [2, 32], strides = [1, 1]} : vector<2x96xf32> to vector<2x32xf32>
    %62 = vector.extract_strided_slice %57 {offsets = [0, 64], sizes = [2, 32], strides = [1, 1]} : vector<2x96xf32> to vector<2x32xf32>
    %63 = arith.mulf %61, %45 : vector<2x32xf32>
    %64 = arith.mulf %60, %59 : vector<2x32xf32>
    %65 = arith.addf %63, %64 : vector<2x32xf32>
    %66 = math.tanh %65 : vector<2x32xf32>
    %67 = arith.mulf %62, %66 : vector<2x32xf32>
    %c4 = arith.constant 4 : index
    %c0_18 = arith.constant 0 : index
    %68 = vector.load %arg17[%c4, %c0_18] : memref<16x32xf32, #tpu.memory_space<vmem>>, vector<2x32xf32>
    tpu.vector_store %arg17[%c4, %c0_18], %67 {strides = array<i32>} : memref<16x32xf32, #tpu.memory_space<vmem>>, vector<2x32xf32>,
    %69 = vector.extract_strided_slice %5 {offsets = [6, 0], sizes = [2, 128], strides = [1, 1]} : vector<16x128xf32> to vector<2x128xf32>
    %cst_19 = arith.constant dense<0.000000e+00> : vector<2x128xf32>
    %70 = tpu.matmul %67, %6, %cst_19 {dimension_numbers = #tpu.dot_dimension_numbers<[1], [0], [0], [1], [0, 0, 1, 1], [], []>} : vector<2x32xf32>, vector<32x128xf32>, vector<2x128xf32> -> vector<2x128xf32>
    %71 = arith.addf %69, %70 : vector<2x128xf32>
    %72 = vector.extract_strided_slice %71 {offsets = [0, 0], sizes = [2, 96], strides = [1, 1]} : vector<2x128xf32> to vector<2x96xf32>
    %73 = arith.negf %72 : vector<2x96xf32>
    %74 = math.exp %73 : vector<2x96xf32>
    %cst_20 = arith.constant 1.000000e+00 : f32
    %75 = vector.broadcast %cst_20 : f32 to vector<2x96xf32>
    %76 = arith.addf %75, %74 : vector<2x96xf32>
    %77 = arith.divf %75, %76 : vector<2x96xf32>
    %78 = vector.extract_strided_slice %71 {offsets = [0, 96], sizes = [2, 32], strides = [1, 1]} : vector<2x128xf32> to vector<2x32xf32>
    %79 = math.tanh %78 : vector<2x32xf32>
    %80 = vector.extract_strided_slice %77 {offsets = [0, 0], sizes = [2, 32], strides = [1, 1]} : vector<2x96xf32> to vector<2x32xf32>
    %81 = vector.extract_strided_slice %77 {offsets = [0, 32], sizes = [2, 32], strides = [1, 1]} : vector<2x96xf32> to vector<2x32xf32>
    %82 = vector.extract_strided_slice %77 {offsets = [0, 64], sizes = [2, 32], strides = [1, 1]} : vector<2x96xf32> to vector<2x32xf32>
    %83 = arith.mulf %81, %65 : vector<2x32xf32>
    %84 = arith.mulf %80, %79 : vector<2x32xf32>
    %85 = arith.addf %83, %84 : vector<2x32xf32>
    %86 = math.tanh %85 : vector<2x32xf32>
    %87 = arith.mulf %82, %86 : vector<2x32xf32>
    %c6 = arith.constant 6 : index
    %c0_21 = arith.constant 0 : index
    %88 = vector.load %arg17[%c6, %c0_21] : memref<16x32xf32, #tpu.memory_space<vmem>>, vector<2x32xf32>
    tpu.vector_store %arg17[%c6, %c0_21], %87 {strides = array<i32>} : memref<16x32xf32, #tpu.memory_space<vmem>>, vector<2x32xf32>,
    %89 = vector.extract_strided_slice %5 {offsets = [8, 0], sizes = [2, 128], strides = [1, 1]} : vector<16x128xf32> to vector<2x128xf32>
    %cst_22 = arith.constant dense<0.000000e+00> : vector<2x128xf32>
    %90 = tpu.matmul %87, %6, %cst_22 {dimension_numbers = #tpu.dot_dimension_numbers<[1], [0], [0], [1], [0, 0, 1, 1], [], []>} : vector<2x32xf32>, vector<32x128xf32>, vector<2x128xf32> -> vector<2x128xf32>
    %91 = arith.addf %89, %90 : vector<2x128xf32>
    %92 = vector.extract_strided_slice %91 {offsets = [0, 0], sizes = [2, 96], strides = [1, 1]} : vector<2x128xf32> to vector<2x96xf32>
    %93 = arith.negf %92 : vector<2x96xf32>
    %94 = math.exp %93 : vector<2x96xf32>
    %cst_23 = arith.constant 1.000000e+00 : f32
    %95 = vector.broadcast %cst_23 : f32 to vector<2x96xf32>
    %96 = arith.addf %95, %94 : vector<2x96xf32>
    %97 = arith.divf %95, %96 : vector<2x96xf32>
    %98 = vector.extract_strided_slice %91 {offsets = [0, 96], sizes = [2, 32], strides = [1, 1]} : vector<2x128xf32> to vector<2x32xf32>
    %99 = math.tanh %98 : vector<2x32xf32>
    %100 = vector.extract_strided_slice %97 {offsets = [0, 0], sizes = [2, 32], strides = [1, 1]} : vector<2x96xf32> to vector<2x32xf32>
    %101 = vector.extract_strided_slice %97 {offsets = [0, 32], sizes = [2, 32], strides = [1, 1]} : vector<2x96xf32> to vector<2x32xf32>
    %102 = vector.extract_strided_slice %97 {offsets = [0, 64], sizes = [2, 32], strides = [1, 1]} : vector<2x96xf32> to vector<2x32xf32>
    %103 = arith.mulf %101, %85 : vector<2x32xf32>
    %104 = arith.mulf %100, %99 : vector<2x32xf32>
    %105 = arith.addf %103, %104 : vector<2x32xf32>
    %106 = math.tanh %105 : vector<2x32xf32>
    %107 = arith.mulf %102, %106 : vector<2x32xf32>
    %c8 = arith.constant 8 : index
    %c0_24 = arith.constant 0 : index
    %108 = vector.load %arg17[%c8, %c0_24] : memref<16x32xf32, #tpu.memory_space<vmem>>, vector<2x32xf32>
    tpu.vector_store %arg17[%c8, %c0_24], %107 {strides = array<i32>} : memref<16x32xf32, #tpu.memory_space<vmem>>, vector<2x32xf32>,
    %109 = vector.extract_strided_slice %5 {offsets = [10, 0], sizes = [2, 128], strides = [1, 1]} : vector<16x128xf32> to vector<2x128xf32>
    %cst_25 = arith.constant dense<0.000000e+00> : vector<2x128xf32>
    %110 = tpu.matmul %107, %6, %cst_25 {dimension_numbers = #tpu.dot_dimension_numbers<[1], [0], [0], [1], [0, 0, 1, 1], [], []>} : vector<2x32xf32>, vector<32x128xf32>, vector<2x128xf32> -> vector<2x128xf32>
    %111 = arith.addf %109, %110 : vector<2x128xf32>
    %112 = vector.extract_strided_slice %111 {offsets = [0, 0], sizes = [2, 96], strides = [1, 1]} : vector<2x128xf32> to vector<2x96xf32>
    %113 = arith.negf %112 : vector<2x96xf32>
    %114 = math.exp %113 : vector<2x96xf32>
    %cst_26 = arith.constant 1.000000e+00 : f32
    %115 = vector.broadcast %cst_26 : f32 to vector<2x96xf32>
    %116 = arith.addf %115, %114 : vector<2x96xf32>
    %117 = arith.divf %115, %116 : vector<2x96xf32>
    %118 = vector.extract_strided_slice %111 {offsets = [0, 96], sizes = [2, 32], strides = [1, 1]} : vector<2x128xf32> to vector<2x32xf32>
    %119 = math.tanh %118 : vector<2x32xf32>
    %120 = vector.extract_strided_slice %117 {offsets = [0, 0], sizes = [2, 32], strides = [1, 1]} : vector<2x96xf32> to vector<2x32xf32>
    %121 = vector.extract_strided_slice %117 {offsets = [0, 32], sizes = [2, 32], strides = [1, 1]} : vector<2x96xf32> to vector<2x32xf32>
    %122 = vector.extract_strided_slice %117 {offsets = [0, 64], sizes = [2, 32], strides = [1, 1]} : vector<2x96xf32> to vector<2x32xf32>
    %123 = arith.mulf %121, %105 : vector<2x32xf32>
    %124 = arith.mulf %120, %119 : vector<2x32xf32>
    %125 = arith.addf %123, %124 : vector<2x32xf32>
    %126 = math.tanh %125 : vector<2x32xf32>
    %127 = arith.mulf %122, %126 : vector<2x32xf32>
    %c10 = arith.constant 10 : index
    %c0_27 = arith.constant 0 : index
    %128 = vector.load %arg17[%c10, %c0_27] : memref<16x32xf32, #tpu.memory_space<vmem>>, vector<2x32xf32>
    tpu.vector_store %arg17[%c10, %c0_27], %127 {strides = array<i32>} : memref<16x32xf32, #tpu.memory_space<vmem>>, vector<2x32xf32>,
    %129 = vector.extract_strided_slice %5 {offsets = [12, 0], sizes = [2, 128], strides = [1, 1]} : vector<16x128xf32> to vector<2x128xf32>
    %cst_28 = arith.constant dense<0.000000e+00> : vector<2x128xf32>
    %130 = tpu.matmul %127, %6, %cst_28 {dimension_numbers = #tpu.dot_dimension_numbers<[1], [0], [0], [1], [0, 0, 1, 1], [], []>} : vector<2x32xf32>, vector<32x128xf32>, vector<2x128xf32> -> vector<2x128xf32>
    %131 = arith.addf %129, %130 : vector<2x128xf32>
    %132 = vector.extract_strided_slice %131 {offsets = [0, 0], sizes = [2, 96], strides = [1, 1]} : vector<2x128xf32> to vector<2x96xf32>
    %133 = arith.negf %132 : vector<2x96xf32>
    %134 = math.exp %133 : vector<2x96xf32>
    %cst_29 = arith.constant 1.000000e+00 : f32
    %135 = vector.broadcast %cst_29 : f32 to vector<2x96xf32>
    %136 = arith.addf %135, %134 : vector<2x96xf32>
    %137 = arith.divf %135, %136 : vector<2x96xf32>
    %138 = vector.extract_strided_slice %131 {offsets = [0, 96], sizes = [2, 32], strides = [1, 1]} : vector<2x128xf32> to vector<2x32xf32>
    %139 = math.tanh %138 : vector<2x32xf32>
    %140 = vector.extract_strided_slice %137 {offsets = [0, 0], sizes = [2, 32], strides = [1, 1]} : vector<2x96xf32> to vector<2x32xf32>
    %141 = vector.extract_strided_slice %137 {offsets = [0, 32], sizes = [2, 32], strides = [1, 1]} : vector<2x96xf32> to vector<2x32xf32>
    %142 = vector.extract_strided_slice %137 {offsets = [0, 64], sizes = [2, 32], strides = [1, 1]} : vector<2x96xf32> to vector<2x32xf32>
    %143 = arith.mulf %141, %125 : vector<2x32xf32>
    %144 = arith.mulf %140, %139 : vector<2x32xf32>
    %145 = arith.addf %143, %144 : vector<2x32xf32>
    %146 = math.tanh %145 : vector<2x32xf32>
    %147 = arith.mulf %142, %146 : vector<2x32xf32>
    %c12 = arith.constant 12 : index
    %c0_30 = arith.constant 0 : index
    %148 = vector.load %arg17[%c12, %c0_30] : memref<16x32xf32, #tpu.memory_space<vmem>>, vector<2x32xf32>
    tpu.vector_store %arg17[%c12, %c0_30], %147 {strides = array<i32>} : memref<16x32xf32, #tpu.memory_space<vmem>>, vector<2x32xf32>,
    %149 = vector.extract_strided_slice %5 {offsets = [14, 0], sizes = [2, 128], strides = [1, 1]} : vector<16x128xf32> to vector<2x128xf32>
    %cst_31 = arith.constant dense<0.000000e+00> : vector<2x128xf32>
    %150 = tpu.matmul %147, %6, %cst_31 {dimension_numbers = #tpu.dot_dimension_numbers<[1], [0], [0], [1], [0, 0, 1, 1], [], []>} : vector<2x32xf32>, vector<32x128xf32>, vector<2x128xf32> -> vector<2x128xf32>
    %151 = arith.addf %149, %150 : vector<2x128xf32>
    %152 = vector.extract_strided_slice %151 {offsets = [0, 0], sizes = [2, 96], strides = [1, 1]} : vector<2x128xf32> to vector<2x96xf32>
    %153 = arith.negf %152 : vector<2x96xf32>
    %154 = math.exp %153 : vector<2x96xf32>
    %cst_32 = arith.constant 1.000000e+00 : f32
    %155 = vector.broadcast %cst_32 : f32 to vector<2x96xf32>
    %156 = arith.addf %155, %154 : vector<2x96xf32>
    %157 = arith.divf %155, %156 : vector<2x96xf32>
    %158 = vector.extract_strided_slice %151 {offsets = [0, 96], sizes = [2, 32], strides = [1, 1]} : vector<2x128xf32> to vector<2x32xf32>
    %159 = math.tanh %158 : vector<2x32xf32>
    %160 = vector.extract_strided_slice %157 {offsets = [0, 0], sizes = [2, 32], strides = [1, 1]} : vector<2x96xf32> to vector<2x32xf32>
    %161 = vector.extract_strided_slice %157 {offsets = [0, 32], sizes = [2, 32], strides = [1, 1]} : vector<2x96xf32> to vector<2x32xf32>
    %162 = vector.extract_strided_slice %157 {offsets = [0, 64], sizes = [2, 32], strides = [1, 1]} : vector<2x96xf32> to vector<2x32xf32>
    %163 = arith.mulf %161, %145 : vector<2x32xf32>
    %164 = arith.mulf %160, %159 : vector<2x32xf32>
    %165 = arith.addf %163, %164 : vector<2x32xf32>
    %166 = math.tanh %165 : vector<2x32xf32>
    %167 = arith.mulf %162, %166 : vector<2x32xf32>
    %c14 = arith.constant 14 : index
    %c0_33 = arith.constant 0 : index
    %168 = vector.load %arg17[%c14, %c0_33] : memref<16x32xf32, #tpu.memory_space<vmem>>, vector<2x32xf32>
    tpu.vector_store %arg17[%c14, %c0_33], %167 {strides = array<i32>} : memref<16x32xf32, #tpu.memory_space<vmem>>, vector<2x32xf32>,
    %c0_34 = arith.constant 0 : index
    %c0_35 = arith.constant 0 : index
    %c0_36 = arith.constant 0 : index
    %169 = vector.load %arg15[%c0_34, %c0_35, %c0_36] : memref<3x2x32xf32, #tpu.memory_space<vmem>>, vector<1x2x32xf32>
    %170 = vector.shape_cast %169 : vector<1x2x32xf32> to vector<2x32xf32>
    %171 = vector.shape_cast %167 : vector<2x32xf32> to vector<1x2x32xf32>
    tpu.vector_store %arg15[%c0_34, %c0_35, %c0_36], %171 {strides = array<i32>} : memref<3x2x32xf32, #tpu.memory_space<vmem>>, vector<1x2x32xf32>,
    %c0_37 = arith.constant 0 : index
    %c0_38 = arith.constant 0 : index
    %c0_39 = arith.constant 0 : index
    %172 = vector.load %arg16[%c0_37, %c0_38, %c0_39] : memref<3x2x32xf32, #tpu.memory_space<vmem>>, vector<1x2x32xf32>
    %173 = vector.shape_cast %172 : vector<1x2x32xf32> to vector<2x32xf32>
    %174 = vector.shape_cast %165 : vector<2x32xf32> to vector<1x2x32xf32>
    tpu.vector_store %arg16[%c0_37, %c0_38, %c0_39], %174 {strides = array<i32>} : memref<3x2x32xf32, #tpu.memory_space<vmem>>, vector<1x2x32xf32>,
    %c0_40 = arith.constant 0 : index
    %c0_41 = arith.constant 0 : index
    %175 = vector.load %arg17[%c0_40, %c0_41] : memref<16x32xf32, #tpu.memory_space<vmem>>, vector<16x32xf32>
    %c0_42 = arith.constant 0 : index
    %c0_43 = arith.constant 0 : index
    %176 = vector.load %arg4[%c0_42, %c0_43] : memref<32x128xf32, #tpu.memory_space<vmem>>, vector<32x128xf32>
    %cst_44 = arith.constant dense<0.000000e+00> : vector<16x128xf32>
    %177 = tpu.matmul %175, %176, %cst_44 {dimension_numbers = #tpu.dot_dimension_numbers<[1], [0], [0], [1], [0, 0, 1, 1], [], []>} : vector<16x32xf32>, vector<32x128xf32>, vector<16x128xf32> -> vector<16x128xf32>
    %c0_45 = arith.constant 0 : index
    %c0_46 = arith.constant 0 : index
    %178 = vector.load %arg6[%c0_45, %c0_46] : memref<1x128xf32, #tpu.memory_space<vmem>>, vector<1x128xf32>
    %179 = vector.broadcast %178 : vector<1x128xf32> to vector<16x128xf32>
    %180 = arith.addf %177, %179 : vector<16x128xf32>
    %c0_47 = arith.constant 0 : index
    %c0_48 = arith.constant 0 : index
    %181 = vector.load %arg5[%c0_47, %c0_48] : memref<32x128xf32, #tpu.memory_space<vmem>>, vector<32x128xf32>
    %cst_49 = arith.constant 0.000000e+00 : f32
    %182 = vector.broadcast %cst_49 : f32 to vector<2x32xf32>
    %cst_50 = arith.constant 0.000000e+00 : f32
    %183 = vector.broadcast %cst_50 : f32 to vector<2x32xf32>
    %184 = vector.extract_strided_slice %180 {offsets = [0, 0], sizes = [2, 128], strides = [1, 1]} : vector<16x128xf32> to vector<2x128xf32>
    %cst_51 = arith.constant dense<0.000000e+00> : vector<2x128xf32>
    %185 = tpu.matmul %182, %181, %cst_51 {dimension_numbers = #tpu.dot_dimension_numbers<[1], [0], [0], [1], [0, 0, 1, 1], [], []>} : vector<2x32xf32>, vector<32x128xf32>, vector<2x128xf32> -> vector<2x128xf32>
    %186 = arith.addf %184, %185 : vector<2x128xf32>
    %187 = vector.extract_strided_slice %186 {offsets = [0, 0], sizes = [2, 96], strides = [1, 1]} : vector<2x128xf32> to vector<2x96xf32>
    %188 = arith.negf %187 : vector<2x96xf32>
    %189 = math.exp %188 : vector<2x96xf32>
    %cst_52 = arith.constant 1.000000e+00 : f32
    %190 = vector.broadcast %cst_52 : f32 to vector<2x96xf32>
    %191 = arith.addf %190, %189 : vector<2x96xf32>
    %192 = arith.divf %190, %191 : vector<2x96xf32>
    %193 = vector.extract_strided_slice %186 {offsets = [0, 96], sizes = [2, 32], strides = [1, 1]} : vector<2x128xf32> to vector<2x32xf32>
    %194 = math.tanh %193 : vector<2x32xf32>
    %195 = vector.extract_strided_slice %192 {offsets = [0, 0], sizes = [2, 32], strides = [1, 1]} : vector<2x96xf32> to vector<2x32xf32>
    %196 = vector.extract_strided_slice %192 {offsets = [0, 32], sizes = [2, 32], strides = [1, 1]} : vector<2x96xf32> to vector<2x32xf32>
    %197 = vector.extract_strided_slice %192 {offsets = [0, 64], sizes = [2, 32], strides = [1, 1]} : vector<2x96xf32> to vector<2x32xf32>
    %198 = arith.mulf %196, %183 : vector<2x32xf32>
    %199 = arith.mulf %195, %194 : vector<2x32xf32>
    %200 = arith.addf %198, %199 : vector<2x32xf32>
    %201 = math.tanh %200 : vector<2x32xf32>
    %202 = arith.mulf %197, %201 : vector<2x32xf32>
    %c0_53 = arith.constant 0 : index
    %c0_54 = arith.constant 0 : index
    %203 = vector.load %arg17[%c0_53, %c0_54] : memref<16x32xf32, #tpu.memory_space<vmem>>, vector<2x32xf32>
    tpu.vector_store %arg17[%c0_53, %c0_54], %202 {strides = array<i32>} : memref<16x32xf32, #tpu.memory_space<vmem>>, vector<2x32xf32>,
    %204 = vector.extract_strided_slice %180 {offsets = [2, 0], sizes = [2, 128], strides = [1, 1]} : vector<16x128xf32> to vector<2x128xf32>
    %cst_55 = arith.constant dense<0.000000e+00> : vector<2x128xf32>
    %205 = tpu.matmul %202, %181, %cst_55 {dimension_numbers = #tpu.dot_dimension_numbers<[1], [0], [0], [1], [0, 0, 1, 1], [], []>} : vector<2x32xf32>, vector<32x128xf32>, vector<2x128xf32> -> vector<2x128xf32>
    %206 = arith.addf %204, %205 : vector<2x128xf32>
    %207 = vector.extract_strided_slice %206 {offsets = [0, 0], sizes = [2, 96], strides = [1, 1]} : vector<2x128xf32> to vector<2x96xf32>
    %208 = arith.negf %207 : vector<2x96xf32>
    %209 = math.exp %208 : vector<2x96xf32>
    %cst_56 = arith.constant 1.000000e+00 : f32
    %210 = vector.broadcast %cst_56 : f32 to vector<2x96xf32>
    %211 = arith.addf %210, %209 : vector<2x96xf32>
    %212 = arith.divf %210, %211 : vector<2x96xf32>
    %213 = vector.extract_strided_slice %206 {offsets = [0, 96], sizes = [2, 32], strides = [1, 1]} : vector<2x128xf32> to vector<2x32xf32>
    %214 = math.tanh %213 : vector<2x32xf32>
    %215 = vector.extract_strided_slice %212 {offsets = [0, 0], sizes = [2, 32], strides = [1, 1]} : vector<2x96xf32> to vector<2x32xf32>
    %216 = vector.extract_strided_slice %212 {offsets = [0, 32], sizes = [2, 32], strides = [1, 1]} : vector<2x96xf32> to vector<2x32xf32>
    %217 = vector.extract_strided_slice %212 {offsets = [0, 64], sizes = [2, 32], strides = [1, 1]} : vector<2x96xf32> to vector<2x32xf32>
    %218 = arith.mulf %216, %200 : vector<2x32xf32>
    %219 = arith.mulf %215, %214 : vector<2x32xf32>
    %220 = arith.addf %218, %219 : vector<2x32xf32>
    %221 = math.tanh %220 : vector<2x32xf32>
    %222 = arith.mulf %217, %221 : vector<2x32xf32>
    %c2_57 = arith.constant 2 : index
    %c0_58 = arith.constant 0 : index
    %223 = vector.load %arg17[%c2_57, %c0_58] : memref<16x32xf32, #tpu.memory_space<vmem>>, vector<2x32xf32>
    tpu.vector_store %arg17[%c2_57, %c0_58], %222 {strides = array<i32>} : memref<16x32xf32, #tpu.memory_space<vmem>>, vector<2x32xf32>,
    %224 = vector.extract_strided_slice %180 {offsets = [4, 0], sizes = [2, 128], strides = [1, 1]} : vector<16x128xf32> to vector<2x128xf32>
    %cst_59 = arith.constant dense<0.000000e+00> : vector<2x128xf32>
    %225 = tpu.matmul %222, %181, %cst_59 {dimension_numbers = #tpu.dot_dimension_numbers<[1], [0], [0], [1], [0, 0, 1, 1], [], []>} : vector<2x32xf32>, vector<32x128xf32>, vector<2x128xf32> -> vector<2x128xf32>
    %226 = arith.addf %224, %225 : vector<2x128xf32>
    %227 = vector.extract_strided_slice %226 {offsets = [0, 0], sizes = [2, 96], strides = [1, 1]} : vector<2x128xf32> to vector<2x96xf32>
    %228 = arith.negf %227 : vector<2x96xf32>
    %229 = math.exp %228 : vector<2x96xf32>
    %cst_60 = arith.constant 1.000000e+00 : f32
    %230 = vector.broadcast %cst_60 : f32 to vector<2x96xf32>
    %231 = arith.addf %230, %229 : vector<2x96xf32>
    %232 = arith.divf %230, %231 : vector<2x96xf32>
    %233 = vector.extract_strided_slice %226 {offsets = [0, 96], sizes = [2, 32], strides = [1, 1]} : vector<2x128xf32> to vector<2x32xf32>
    %234 = math.tanh %233 : vector<2x32xf32>
    %235 = vector.extract_strided_slice %232 {offsets = [0, 0], sizes = [2, 32], strides = [1, 1]} : vector<2x96xf32> to vector<2x32xf32>
    %236 = vector.extract_strided_slice %232 {offsets = [0, 32], sizes = [2, 32], strides = [1, 1]} : vector<2x96xf32> to vector<2x32xf32>
    %237 = vector.extract_strided_slice %232 {offsets = [0, 64], sizes = [2, 32], strides = [1, 1]} : vector<2x96xf32> to vector<2x32xf32>
    %238 = arith.mulf %236, %220 : vector<2x32xf32>
    %239 = arith.mulf %235, %234 : vector<2x32xf32>
    %240 = arith.addf %238, %239 : vector<2x32xf32>
    %241 = math.tanh %240 : vector<2x32xf32>
    %242 = arith.mulf %237, %241 : vector<2x32xf32>
    %c4_61 = arith.constant 4 : index
    %c0_62 = arith.constant 0 : index
    %243 = vector.load %arg17[%c4_61, %c0_62] : memref<16x32xf32, #tpu.memory_space<vmem>>, vector<2x32xf32>
    tpu.vector_store %arg17[%c4_61, %c0_62], %242 {strides = array<i32>} : memref<16x32xf32, #tpu.memory_space<vmem>>, vector<2x32xf32>,
    %244 = vector.extract_strided_slice %180 {offsets = [6, 0], sizes = [2, 128], strides = [1, 1]} : vector<16x128xf32> to vector<2x128xf32>
    %cst_63 = arith.constant dense<0.000000e+00> : vector<2x128xf32>
    %245 = tpu.matmul %242, %181, %cst_63 {dimension_numbers = #tpu.dot_dimension_numbers<[1], [0], [0], [1], [0, 0, 1, 1], [], []>} : vector<2x32xf32>, vector<32x128xf32>, vector<2x128xf32> -> vector<2x128xf32>
    %246 = arith.addf %244, %245 : vector<2x128xf32>
    %247 = vector.extract_strided_slice %246 {offsets = [0, 0], sizes = [2, 96], strides = [1, 1]} : vector<2x128xf32> to vector<2x96xf32>
    %248 = arith.negf %247 : vector<2x96xf32>
    %249 = math.exp %248 : vector<2x96xf32>
    %cst_64 = arith.constant 1.000000e+00 : f32
    %250 = vector.broadcast %cst_64 : f32 to vector<2x96xf32>
    %251 = arith.addf %250, %249 : vector<2x96xf32>
    %252 = arith.divf %250, %251 : vector<2x96xf32>
    %253 = vector.extract_strided_slice %246 {offsets = [0, 96], sizes = [2, 32], strides = [1, 1]} : vector<2x128xf32> to vector<2x32xf32>
    %254 = math.tanh %253 : vector<2x32xf32>
    %255 = vector.extract_strided_slice %252 {offsets = [0, 0], sizes = [2, 32], strides = [1, 1]} : vector<2x96xf32> to vector<2x32xf32>
    %256 = vector.extract_strided_slice %252 {offsets = [0, 32], sizes = [2, 32], strides = [1, 1]} : vector<2x96xf32> to vector<2x32xf32>
    %257 = vector.extract_strided_slice %252 {offsets = [0, 64], sizes = [2, 32], strides = [1, 1]} : vector<2x96xf32> to vector<2x32xf32>
    %258 = arith.mulf %256, %240 : vector<2x32xf32>
    %259 = arith.mulf %255, %254 : vector<2x32xf32>
    %260 = arith.addf %258, %259 : vector<2x32xf32>
    %261 = math.tanh %260 : vector<2x32xf32>
    %262 = arith.mulf %257, %261 : vector<2x32xf32>
    %c6_65 = arith.constant 6 : index
    %c0_66 = arith.constant 0 : index
    %263 = vector.load %arg17[%c6_65, %c0_66] : memref<16x32xf32, #tpu.memory_space<vmem>>, vector<2x32xf32>
    tpu.vector_store %arg17[%c6_65, %c0_66], %262 {strides = array<i32>} : memref<16x32xf32, #tpu.memory_space<vmem>>, vector<2x32xf32>,
    %264 = vector.extract_strided_slice %180 {offsets = [8, 0], sizes = [2, 128], strides = [1, 1]} : vector<16x128xf32> to vector<2x128xf32>
    %cst_67 = arith.constant dense<0.000000e+00> : vector<2x128xf32>
    %265 = tpu.matmul %262, %181, %cst_67 {dimension_numbers = #tpu.dot_dimension_numbers<[1], [0], [0], [1], [0, 0, 1, 1], [], []>} : vector<2x32xf32>, vector<32x128xf32>, vector<2x128xf32> -> vector<2x128xf32>
    %266 = arith.addf %264, %265 : vector<2x128xf32>
    %267 = vector.extract_strided_slice %266 {offsets = [0, 0], sizes = [2, 96], strides = [1, 1]} : vector<2x128xf32> to vector<2x96xf32>
    %268 = arith.negf %267 : vector<2x96xf32>
    %269 = math.exp %268 : vector<2x96xf32>
    %cst_68 = arith.constant 1.000000e+00 : f32
    %270 = vector.broadcast %cst_68 : f32 to vector<2x96xf32>
    %271 = arith.addf %270, %269 : vector<2x96xf32>
    %272 = arith.divf %270, %271 : vector<2x96xf32>
    %273 = vector.extract_strided_slice %266 {offsets = [0, 96], sizes = [2, 32], strides = [1, 1]} : vector<2x128xf32> to vector<2x32xf32>
    %274 = math.tanh %273 : vector<2x32xf32>
    %275 = vector.extract_strided_slice %272 {offsets = [0, 0], sizes = [2, 32], strides = [1, 1]} : vector<2x96xf32> to vector<2x32xf32>
    %276 = vector.extract_strided_slice %272 {offsets = [0, 32], sizes = [2, 32], strides = [1, 1]} : vector<2x96xf32> to vector<2x32xf32>
    %277 = vector.extract_strided_slice %272 {offsets = [0, 64], sizes = [2, 32], strides = [1, 1]} : vector<2x96xf32> to vector<2x32xf32>
    %278 = arith.mulf %276, %260 : vector<2x32xf32>
    %279 = arith.mulf %275, %274 : vector<2x32xf32>
    %280 = arith.addf %278, %279 : vector<2x32xf32>
    %281 = math.tanh %280 : vector<2x32xf32>
    %282 = arith.mulf %277, %281 : vector<2x32xf32>
    %c8_69 = arith.constant 8 : index
    %c0_70 = arith.constant 0 : index
    %283 = vector.load %arg17[%c8_69, %c0_70] : memref<16x32xf32, #tpu.memory_space<vmem>>, vector<2x32xf32>
    tpu.vector_store %arg17[%c8_69, %c0_70], %282 {strides = array<i32>} : memref<16x32xf32, #tpu.memory_space<vmem>>, vector<2x32xf32>,
    %284 = vector.extract_strided_slice %180 {offsets = [10, 0], sizes = [2, 128], strides = [1, 1]} : vector<16x128xf32> to vector<2x128xf32>
    %cst_71 = arith.constant dense<0.000000e+00> : vector<2x128xf32>
    %285 = tpu.matmul %282, %181, %cst_71 {dimension_numbers = #tpu.dot_dimension_numbers<[1], [0], [0], [1], [0, 0, 1, 1], [], []>} : vector<2x32xf32>, vector<32x128xf32>, vector<2x128xf32> -> vector<2x128xf32>
    %286 = arith.addf %284, %285 : vector<2x128xf32>
    %287 = vector.extract_strided_slice %286 {offsets = [0, 0], sizes = [2, 96], strides = [1, 1]} : vector<2x128xf32> to vector<2x96xf32>
    %288 = arith.negf %287 : vector<2x96xf32>
    %289 = math.exp %288 : vector<2x96xf32>
    %cst_72 = arith.constant 1.000000e+00 : f32
    %290 = vector.broadcast %cst_72 : f32 to vector<2x96xf32>
    %291 = arith.addf %290, %289 : vector<2x96xf32>
    %292 = arith.divf %290, %291 : vector<2x96xf32>
    %293 = vector.extract_strided_slice %286 {offsets = [0, 96], sizes = [2, 32], strides = [1, 1]} : vector<2x128xf32> to vector<2x32xf32>
    %294 = math.tanh %293 : vector<2x32xf32>
    %295 = vector.extract_strided_slice %292 {offsets = [0, 0], sizes = [2, 32], strides = [1, 1]} : vector<2x96xf32> to vector<2x32xf32>
    %296 = vector.extract_strided_slice %292 {offsets = [0, 32], sizes = [2, 32], strides = [1, 1]} : vector<2x96xf32> to vector<2x32xf32>
    %297 = vector.extract_strided_slice %292 {offsets = [0, 64], sizes = [2, 32], strides = [1, 1]} : vector<2x96xf32> to vector<2x32xf32>
    %298 = arith.mulf %296, %280 : vector<2x32xf32>
    %299 = arith.mulf %295, %294 : vector<2x32xf32>
    %300 = arith.addf %298, %299 : vector<2x32xf32>
    %301 = math.tanh %300 : vector<2x32xf32>
    %302 = arith.mulf %297, %301 : vector<2x32xf32>
    %c10_73 = arith.constant 10 : index
    %c0_74 = arith.constant 0 : index
    %303 = vector.load %arg17[%c10_73, %c0_74] : memref<16x32xf32, #tpu.memory_space<vmem>>, vector<2x32xf32>
    tpu.vector_store %arg17[%c10_73, %c0_74], %302 {strides = array<i32>} : memref<16x32xf32, #tpu.memory_space<vmem>>, vector<2x32xf32>,
    %304 = vector.extract_strided_slice %180 {offsets = [12, 0], sizes = [2, 128], strides = [1, 1]} : vector<16x128xf32> to vector<2x128xf32>
    %cst_75 = arith.constant dense<0.000000e+00> : vector<2x128xf32>
    %305 = tpu.matmul %302, %181, %cst_75 {dimension_numbers = #tpu.dot_dimension_numbers<[1], [0], [0], [1], [0, 0, 1, 1], [], []>} : vector<2x32xf32>, vector<32x128xf32>, vector<2x128xf32> -> vector<2x128xf32>
    %306 = arith.addf %304, %305 : vector<2x128xf32>
    %307 = vector.extract_strided_slice %306 {offsets = [0, 0], sizes = [2, 96], strides = [1, 1]} : vector<2x128xf32> to vector<2x96xf32>
    %308 = arith.negf %307 : vector<2x96xf32>
    %309 = math.exp %308 : vector<2x96xf32>
    %cst_76 = arith.constant 1.000000e+00 : f32
    %310 = vector.broadcast %cst_76 : f32 to vector<2x96xf32>
    %311 = arith.addf %310, %309 : vector<2x96xf32>
    %312 = arith.divf %310, %311 : vector<2x96xf32>
    %313 = vector.extract_strided_slice %306 {offsets = [0, 96], sizes = [2, 32], strides = [1, 1]} : vector<2x128xf32> to vector<2x32xf32>
    %314 = math.tanh %313 : vector<2x32xf32>
    %315 = vector.extract_strided_slice %312 {offsets = [0, 0], sizes = [2, 32], strides = [1, 1]} : vector<2x96xf32> to vector<2x32xf32>
    %316 = vector.extract_strided_slice %312 {offsets = [0, 32], sizes = [2, 32], strides = [1, 1]} : vector<2x96xf32> to vector<2x32xf32>
    %317 = vector.extract_strided_slice %312 {offsets = [0, 64], sizes = [2, 32], strides = [1, 1]} : vector<2x96xf32> to vector<2x32xf32>
    %318 = arith.mulf %316, %300 : vector<2x32xf32>
    %319 = arith.mulf %315, %314 : vector<2x32xf32>
    %320 = arith.addf %318, %319 : vector<2x32xf32>
    %321 = math.tanh %320 : vector<2x32xf32>
    %322 = arith.mulf %317, %321 : vector<2x32xf32>
    %c12_77 = arith.constant 12 : index
    %c0_78 = arith.constant 0 : index
    %323 = vector.load %arg17[%c12_77, %c0_78] : memref<16x32xf32, #tpu.memory_space<vmem>>, vector<2x32xf32>
    tpu.vector_store %arg17[%c12_77, %c0_78], %322 {strides = array<i32>} : memref<16x32xf32, #tpu.memory_space<vmem>>, vector<2x32xf32>,
    %324 = vector.extract_strided_slice %180 {offsets = [14, 0], sizes = [2, 128], strides = [1, 1]} : vector<16x128xf32> to vector<2x128xf32>
    %cst_79 = arith.constant dense<0.000000e+00> : vector<2x128xf32>
    %325 = tpu.matmul %322, %181, %cst_79 {dimension_numbers = #tpu.dot_dimension_numbers<[1], [0], [0], [1], [0, 0, 1, 1], [], []>} : vector<2x32xf32>, vector<32x128xf32>, vector<2x128xf32> -> vector<2x128xf32>
    %326 = arith.addf %324, %325 : vector<2x128xf32>
    %327 = vector.extract_strided_slice %326 {offsets = [0, 0], sizes = [2, 96], strides = [1, 1]} : vector<2x128xf32> to vector<2x96xf32>
    %328 = arith.negf %327 : vector<2x96xf32>
    %329 = math.exp %328 : vector<2x96xf32>
    %cst_80 = arith.constant 1.000000e+00 : f32
    %330 = vector.broadcast %cst_80 : f32 to vector<2x96xf32>
    %331 = arith.addf %330, %329 : vector<2x96xf32>
    %332 = arith.divf %330, %331 : vector<2x96xf32>
    %333 = vector.extract_strided_slice %326 {offsets = [0, 96], sizes = [2, 32], strides = [1, 1]} : vector<2x128xf32> to vector<2x32xf32>
    %334 = math.tanh %333 : vector<2x32xf32>
    %335 = vector.extract_strided_slice %332 {offsets = [0, 0], sizes = [2, 32], strides = [1, 1]} : vector<2x96xf32> to vector<2x32xf32>
    %336 = vector.extract_strided_slice %332 {offsets = [0, 32], sizes = [2, 32], strides = [1, 1]} : vector<2x96xf32> to vector<2x32xf32>
    %337 = vector.extract_strided_slice %332 {offsets = [0, 64], sizes = [2, 32], strides = [1, 1]} : vector<2x96xf32> to vector<2x32xf32>
    %338 = arith.mulf %336, %320 : vector<2x32xf32>
    %339 = arith.mulf %335, %334 : vector<2x32xf32>
    %340 = arith.addf %338, %339 : vector<2x32xf32>
    %341 = math.tanh %340 : vector<2x32xf32>
    %342 = arith.mulf %337, %341 : vector<2x32xf32>
    %c14_81 = arith.constant 14 : index
    %c0_82 = arith.constant 0 : index
    %343 = vector.load %arg17[%c14_81, %c0_82] : memref<16x32xf32, #tpu.memory_space<vmem>>, vector<2x32xf32>
    tpu.vector_store %arg17[%c14_81, %c0_82], %342 {strides = array<i32>} : memref<16x32xf32, #tpu.memory_space<vmem>>, vector<2x32xf32>,
    %c1 = arith.constant 1 : index
    %c0_83 = arith.constant 0 : index
    %c0_84 = arith.constant 0 : index
    %344 = vector.load %arg15[%c1, %c0_83, %c0_84] : memref<3x2x32xf32, #tpu.memory_space<vmem>>, vector<1x2x32xf32>
    %345 = vector.shape_cast %344 : vector<1x2x32xf32> to vector<2x32xf32>
    %346 = vector.shape_cast %342 : vector<2x32xf32> to vector<1x2x32xf32>
    tpu.vector_store %arg15[%c1, %c0_83, %c0_84], %346 {strides = array<i32>} : memref<3x2x32xf32, #tpu.memory_space<vmem>>, vector<1x2x32xf32>,
    %c1_85 = arith.constant 1 : index
    %c0_86 = arith.constant 0 : index
    %c0_87 = arith.constant 0 : index
    %347 = vector.load %arg16[%c1_85, %c0_86, %c0_87] : memref<3x2x32xf32, #tpu.memory_space<vmem>>, vector<1x2x32xf32>
    %348 = vector.shape_cast %347 : vector<1x2x32xf32> to vector<2x32xf32>
    %349 = vector.shape_cast %340 : vector<2x32xf32> to vector<1x2x32xf32>
    tpu.vector_store %arg16[%c1_85, %c0_86, %c0_87], %349 {strides = array<i32>} : memref<3x2x32xf32, #tpu.memory_space<vmem>>, vector<1x2x32xf32>,
    %c0_88 = arith.constant 0 : index
    %c0_89 = arith.constant 0 : index
    %350 = vector.load %arg17[%c0_88, %c0_89] : memref<16x32xf32, #tpu.memory_space<vmem>>, vector<16x32xf32>
    %c0_90 = arith.constant 0 : index
    %c0_91 = arith.constant 0 : index
    %351 = vector.load %arg7[%c0_90, %c0_91] : memref<32x128xf32, #tpu.memory_space<vmem>>, vector<32x128xf32>
    %cst_92 = arith.constant dense<0.000000e+00> : vector<16x128xf32>
    %352 = tpu.matmul %350, %351, %cst_92 {dimension_numbers = #tpu.dot_dimension_numbers<[1], [0], [0], [1], [0, 0, 1, 1], [], []>} : vector<16x32xf32>, vector<32x128xf32>, vector<16x128xf32> -> vector<16x128xf32>
    %c0_93 = arith.constant 0 : index
    %c0_94 = arith.constant 0 : index
    %353 = vector.load %arg9[%c0_93, %c0_94] : memref<1x128xf32, #tpu.memory_space<vmem>>, vector<1x128xf32>
    %354 = vector.broadcast %353 : vector<1x128xf32> to vector<16x128xf32>
    %355 = arith.addf %352, %354 : vector<16x128xf32>
    %c0_95 = arith.constant 0 : index
    %c0_96 = arith.constant 0 : index
    %356 = vector.load %arg8[%c0_95, %c0_96] : memref<32x128xf32, #tpu.memory_space<vmem>>, vector<32x128xf32>
    %cst_97 = arith.constant 0.000000e+00 : f32
    %357 = vector.broadcast %cst_97 : f32 to vector<2x32xf32>
    %cst_98 = arith.constant 0.000000e+00 : f32
    %358 = vector.broadcast %cst_98 : f32 to vector<2x32xf32>
    %359 = vector.extract_strided_slice %355 {offsets = [0, 0], sizes = [2, 128], strides = [1, 1]} : vector<16x128xf32> to vector<2x128xf32>
    %cst_99 = arith.constant dense<0.000000e+00> : vector<2x128xf32>
    %360 = tpu.matmul %357, %356, %cst_99 {dimension_numbers = #tpu.dot_dimension_numbers<[1], [0], [0], [1], [0, 0, 1, 1], [], []>} : vector<2x32xf32>, vector<32x128xf32>, vector<2x128xf32> -> vector<2x128xf32>
    %361 = arith.addf %359, %360 : vector<2x128xf32>
    %362 = vector.extract_strided_slice %361 {offsets = [0, 0], sizes = [2, 96], strides = [1, 1]} : vector<2x128xf32> to vector<2x96xf32>
    %363 = arith.negf %362 : vector<2x96xf32>
    %364 = math.exp %363 : vector<2x96xf32>
    %cst_100 = arith.constant 1.000000e+00 : f32
    %365 = vector.broadcast %cst_100 : f32 to vector<2x96xf32>
    %366 = arith.addf %365, %364 : vector<2x96xf32>
    %367 = arith.divf %365, %366 : vector<2x96xf32>
    %368 = vector.extract_strided_slice %361 {offsets = [0, 96], sizes = [2, 32], strides = [1, 1]} : vector<2x128xf32> to vector<2x32xf32>
    %369 = math.tanh %368 : vector<2x32xf32>
    %370 = vector.extract_strided_slice %367 {offsets = [0, 0], sizes = [2, 32], strides = [1, 1]} : vector<2x96xf32> to vector<2x32xf32>
    %371 = vector.extract_strided_slice %367 {offsets = [0, 32], sizes = [2, 32], strides = [1, 1]} : vector<2x96xf32> to vector<2x32xf32>
    %372 = vector.extract_strided_slice %367 {offsets = [0, 64], sizes = [2, 32], strides = [1, 1]} : vector<2x96xf32> to vector<2x32xf32>
    %373 = arith.mulf %371, %358 : vector<2x32xf32>
    %374 = arith.mulf %370, %369 : vector<2x32xf32>
    %375 = arith.addf %373, %374 : vector<2x32xf32>
    %376 = math.tanh %375 : vector<2x32xf32>
    %377 = arith.mulf %372, %376 : vector<2x32xf32>
    %378 = vector.extract_strided_slice %355 {offsets = [2, 0], sizes = [2, 128], strides = [1, 1]} : vector<16x128xf32> to vector<2x128xf32>
    %cst_101 = arith.constant dense<0.000000e+00> : vector<2x128xf32>
    %379 = tpu.matmul %377, %356, %cst_101 {dimension_numbers = #tpu.dot_dimension_numbers<[1], [0], [0], [1], [0, 0, 1, 1], [], []>} : vector<2x32xf32>, vector<32x128xf32>, vector<2x128xf32> -> vector<2x128xf32>
    %380 = arith.addf %378, %379 : vector<2x128xf32>
    %381 = vector.extract_strided_slice %380 {offsets = [0, 0], sizes = [2, 96], strides = [1, 1]} : vector<2x128xf32> to vector<2x96xf32>
    %382 = arith.negf %381 : vector<2x96xf32>
    %383 = math.exp %382 : vector<2x96xf32>
    %cst_102 = arith.constant 1.000000e+00 : f32
    %384 = vector.broadcast %cst_102 : f32 to vector<2x96xf32>
    %385 = arith.addf %384, %383 : vector<2x96xf32>
    %386 = arith.divf %384, %385 : vector<2x96xf32>
    %387 = vector.extract_strided_slice %380 {offsets = [0, 96], sizes = [2, 32], strides = [1, 1]} : vector<2x128xf32> to vector<2x32xf32>
    %388 = math.tanh %387 : vector<2x32xf32>
    %389 = vector.extract_strided_slice %386 {offsets = [0, 0], sizes = [2, 32], strides = [1, 1]} : vector<2x96xf32> to vector<2x32xf32>
    %390 = vector.extract_strided_slice %386 {offsets = [0, 32], sizes = [2, 32], strides = [1, 1]} : vector<2x96xf32> to vector<2x32xf32>
    %391 = vector.extract_strided_slice %386 {offsets = [0, 64], sizes = [2, 32], strides = [1, 1]} : vector<2x96xf32> to vector<2x32xf32>
    %392 = arith.mulf %390, %375 : vector<2x32xf32>
    %393 = arith.mulf %389, %388 : vector<2x32xf32>
    %394 = arith.addf %392, %393 : vector<2x32xf32>
    %395 = math.tanh %394 : vector<2x32xf32>
    %396 = arith.mulf %391, %395 : vector<2x32xf32>
    %397 = vector.extract_strided_slice %355 {offsets = [4, 0], sizes = [2, 128], strides = [1, 1]} : vector<16x128xf32> to vector<2x128xf32>
    %cst_103 = arith.constant dense<0.000000e+00> : vector<2x128xf32>
    %398 = tpu.matmul %396, %356, %cst_103 {dimension_numbers = #tpu.dot_dimension_numbers<[1], [0], [0], [1], [0, 0, 1, 1], [], []>} : vector<2x32xf32>, vector<32x128xf32>, vector<2x128xf32> -> vector<2x128xf32>
    %399 = arith.addf %397, %398 : vector<2x128xf32>
    %400 = vector.extract_strided_slice %399 {offsets = [0, 0], sizes = [2, 96], strides = [1, 1]} : vector<2x128xf32> to vector<2x96xf32>
    %401 = arith.negf %400 : vector<2x96xf32>
    %402 = math.exp %401 : vector<2x96xf32>
    %cst_104 = arith.constant 1.000000e+00 : f32
    %403 = vector.broadcast %cst_104 : f32 to vector<2x96xf32>
    %404 = arith.addf %403, %402 : vector<2x96xf32>
    %405 = arith.divf %403, %404 : vector<2x96xf32>
    %406 = vector.extract_strided_slice %399 {offsets = [0, 96], sizes = [2, 32], strides = [1, 1]} : vector<2x128xf32> to vector<2x32xf32>
    %407 = math.tanh %406 : vector<2x32xf32>
    %408 = vector.extract_strided_slice %405 {offsets = [0, 0], sizes = [2, 32], strides = [1, 1]} : vector<2x96xf32> to vector<2x32xf32>
    %409 = vector.extract_strided_slice %405 {offsets = [0, 32], sizes = [2, 32], strides = [1, 1]} : vector<2x96xf32> to vector<2x32xf32>
    %410 = vector.extract_strided_slice %405 {offsets = [0, 64], sizes = [2, 32], strides = [1, 1]} : vector<2x96xf32> to vector<2x32xf32>
    %411 = arith.mulf %409, %394 : vector<2x32xf32>
    %412 = arith.mulf %408, %407 : vector<2x32xf32>
    %413 = arith.addf %411, %412 : vector<2x32xf32>
    %414 = math.tanh %413 : vector<2x32xf32>
    %415 = arith.mulf %410, %414 : vector<2x32xf32>
    %416 = vector.extract_strided_slice %355 {offsets = [6, 0], sizes = [2, 128], strides = [1, 1]} : vector<16x128xf32> to vector<2x128xf32>
    %cst_105 = arith.constant dense<0.000000e+00> : vector<2x128xf32>
    %417 = tpu.matmul %415, %356, %cst_105 {dimension_numbers = #tpu.dot_dimension_numbers<[1], [0], [0], [1], [0, 0, 1, 1], [], []>} : vector<2x32xf32>, vector<32x128xf32>, vector<2x128xf32> -> vector<2x128xf32>
    %418 = arith.addf %416, %417 : vector<2x128xf32>
    %419 = vector.extract_strided_slice %418 {offsets = [0, 0], sizes = [2, 96], strides = [1, 1]} : vector<2x128xf32> to vector<2x96xf32>
    %420 = arith.negf %419 : vector<2x96xf32>
    %421 = math.exp %420 : vector<2x96xf32>
    %cst_106 = arith.constant 1.000000e+00 : f32
    %422 = vector.broadcast %cst_106 : f32 to vector<2x96xf32>
    %423 = arith.addf %422, %421 : vector<2x96xf32>
    %424 = arith.divf %422, %423 : vector<2x96xf32>
    %425 = vector.extract_strided_slice %418 {offsets = [0, 96], sizes = [2, 32], strides = [1, 1]} : vector<2x128xf32> to vector<2x32xf32>
    %426 = math.tanh %425 : vector<2x32xf32>
    %427 = vector.extract_strided_slice %424 {offsets = [0, 0], sizes = [2, 32], strides = [1, 1]} : vector<2x96xf32> to vector<2x32xf32>
    %428 = vector.extract_strided_slice %424 {offsets = [0, 32], sizes = [2, 32], strides = [1, 1]} : vector<2x96xf32> to vector<2x32xf32>
    %429 = vector.extract_strided_slice %424 {offsets = [0, 64], sizes = [2, 32], strides = [1, 1]} : vector<2x96xf32> to vector<2x32xf32>
    %430 = arith.mulf %428, %413 : vector<2x32xf32>
    %431 = arith.mulf %427, %426 : vector<2x32xf32>
    %432 = arith.addf %430, %431 : vector<2x32xf32>
    %433 = math.tanh %432 : vector<2x32xf32>
    %434 = arith.mulf %429, %433 : vector<2x32xf32>
    %435 = vector.extract_strided_slice %355 {offsets = [8, 0], sizes = [2, 128], strides = [1, 1]} : vector<16x128xf32> to vector<2x128xf32>
    %cst_107 = arith.constant dense<0.000000e+00> : vector<2x128xf32>
    %436 = tpu.matmul %434, %356, %cst_107 {dimension_numbers = #tpu.dot_dimension_numbers<[1], [0], [0], [1], [0, 0, 1, 1], [], []>} : vector<2x32xf32>, vector<32x128xf32>, vector<2x128xf32> -> vector<2x128xf32>
    %437 = arith.addf %435, %436 : vector<2x128xf32>
    %438 = vector.extract_strided_slice %437 {offsets = [0, 0], sizes = [2, 96], strides = [1, 1]} : vector<2x128xf32> to vector<2x96xf32>
    %439 = arith.negf %438 : vector<2x96xf32>
    %440 = math.exp %439 : vector<2x96xf32>
    %cst_108 = arith.constant 1.000000e+00 : f32
    %441 = vector.broadcast %cst_108 : f32 to vector<2x96xf32>
    %442 = arith.addf %441, %440 : vector<2x96xf32>
    %443 = arith.divf %441, %442 : vector<2x96xf32>
    %444 = vector.extract_strided_slice %437 {offsets = [0, 96], sizes = [2, 32], strides = [1, 1]} : vector<2x128xf32> to vector<2x32xf32>
    %445 = math.tanh %444 : vector<2x32xf32>
    %446 = vector.extract_strided_slice %443 {offsets = [0, 0], sizes = [2, 32], strides = [1, 1]} : vector<2x96xf32> to vector<2x32xf32>
    %447 = vector.extract_strided_slice %443 {offsets = [0, 32], sizes = [2, 32], strides = [1, 1]} : vector<2x96xf32> to vector<2x32xf32>
    %448 = vector.extract_strided_slice %443 {offsets = [0, 64], sizes = [2, 32], strides = [1, 1]} : vector<2x96xf32> to vector<2x32xf32>
    %449 = arith.mulf %447, %432 : vector<2x32xf32>
    %450 = arith.mulf %446, %445 : vector<2x32xf32>
    %451 = arith.addf %449, %450 : vector<2x32xf32>
    %452 = math.tanh %451 : vector<2x32xf32>
    %453 = arith.mulf %448, %452 : vector<2x32xf32>
    %454 = vector.extract_strided_slice %355 {offsets = [10, 0], sizes = [2, 128], strides = [1, 1]} : vector<16x128xf32> to vector<2x128xf32>
    %cst_109 = arith.constant dense<0.000000e+00> : vector<2x128xf32>
    %455 = tpu.matmul %453, %356, %cst_109 {dimension_numbers = #tpu.dot_dimension_numbers<[1], [0], [0], [1], [0, 0, 1, 1], [], []>} : vector<2x32xf32>, vector<32x128xf32>, vector<2x128xf32> -> vector<2x128xf32>
    %456 = arith.addf %454, %455 : vector<2x128xf32>
    %457 = vector.extract_strided_slice %456 {offsets = [0, 0], sizes = [2, 96], strides = [1, 1]} : vector<2x128xf32> to vector<2x96xf32>
    %458 = arith.negf %457 : vector<2x96xf32>
    %459 = math.exp %458 : vector<2x96xf32>
    %cst_110 = arith.constant 1.000000e+00 : f32
    %460 = vector.broadcast %cst_110 : f32 to vector<2x96xf32>
    %461 = arith.addf %460, %459 : vector<2x96xf32>
    %462 = arith.divf %460, %461 : vector<2x96xf32>
    %463 = vector.extract_strided_slice %456 {offsets = [0, 96], sizes = [2, 32], strides = [1, 1]} : vector<2x128xf32> to vector<2x32xf32>
    %464 = math.tanh %463 : vector<2x32xf32>
    %465 = vector.extract_strided_slice %462 {offsets = [0, 0], sizes = [2, 32], strides = [1, 1]} : vector<2x96xf32> to vector<2x32xf32>
    %466 = vector.extract_strided_slice %462 {offsets = [0, 32], sizes = [2, 32], strides = [1, 1]} : vector<2x96xf32> to vector<2x32xf32>
    %467 = vector.extract_strided_slice %462 {offsets = [0, 64], sizes = [2, 32], strides = [1, 1]} : vector<2x96xf32> to vector<2x32xf32>
    %468 = arith.mulf %466, %451 : vector<2x32xf32>
    %469 = arith.mulf %465, %464 : vector<2x32xf32>
    %470 = arith.addf %468, %469 : vector<2x32xf32>
    %471 = math.tanh %470 : vector<2x32xf32>
    %472 = arith.mulf %467, %471 : vector<2x32xf32>
    %473 = vector.extract_strided_slice %355 {offsets = [12, 0], sizes = [2, 128], strides = [1, 1]} : vector<16x128xf32> to vector<2x128xf32>
    %cst_111 = arith.constant dense<0.000000e+00> : vector<2x128xf32>
    %474 = tpu.matmul %472, %356, %cst_111 {dimension_numbers = #tpu.dot_dimension_numbers<[1], [0], [0], [1], [0, 0, 1, 1], [], []>} : vector<2x32xf32>, vector<32x128xf32>, vector<2x128xf32> -> vector<2x128xf32>
    %475 = arith.addf %473, %474 : vector<2x128xf32>
    %476 = vector.extract_strided_slice %475 {offsets = [0, 0], sizes = [2, 96], strides = [1, 1]} : vector<2x128xf32> to vector<2x96xf32>
    %477 = arith.negf %476 : vector<2x96xf32>
    %478 = math.exp %477 : vector<2x96xf32>
    %cst_112 = arith.constant 1.000000e+00 : f32
    %479 = vector.broadcast %cst_112 : f32 to vector<2x96xf32>
    %480 = arith.addf %479, %478 : vector<2x96xf32>
    %481 = arith.divf %479, %480 : vector<2x96xf32>
    %482 = vector.extract_strided_slice %475 {offsets = [0, 96], sizes = [2, 32], strides = [1, 1]} : vector<2x128xf32> to vector<2x32xf32>
    %483 = math.tanh %482 : vector<2x32xf32>
    %484 = vector.extract_strided_slice %481 {offsets = [0, 0], sizes = [2, 32], strides = [1, 1]} : vector<2x96xf32> to vector<2x32xf32>
    %485 = vector.extract_strided_slice %481 {offsets = [0, 32], sizes = [2, 32], strides = [1, 1]} : vector<2x96xf32> to vector<2x32xf32>
    %486 = vector.extract_strided_slice %481 {offsets = [0, 64], sizes = [2, 32], strides = [1, 1]} : vector<2x96xf32> to vector<2x32xf32>
    %487 = arith.mulf %485, %470 : vector<2x32xf32>
    %488 = arith.mulf %484, %483 : vector<2x32xf32>
    %489 = arith.addf %487, %488 : vector<2x32xf32>
    %490 = math.tanh %489 : vector<2x32xf32>
    %491 = arith.mulf %486, %490 : vector<2x32xf32>
    %492 = vector.extract_strided_slice %355 {offsets = [14, 0], sizes = [2, 128], strides = [1, 1]} : vector<16x128xf32> to vector<2x128xf32>
    %cst_113 = arith.constant dense<0.000000e+00> : vector<2x128xf32>
    %493 = tpu.matmul %491, %356, %cst_113 {dimension_numbers = #tpu.dot_dimension_numbers<[1], [0], [0], [1], [0, 0, 1, 1], [], []>} : vector<2x32xf32>, vector<32x128xf32>, vector<2x128xf32> -> vector<2x128xf32>
    %494 = arith.addf %492, %493 : vector<2x128xf32>
    %495 = vector.extract_strided_slice %494 {offsets = [0, 0], sizes = [2, 96], strides = [1, 1]} : vector<2x128xf32> to vector<2x96xf32>
    %496 = arith.negf %495 : vector<2x96xf32>
    %497 = math.exp %496 : vector<2x96xf32>
    %cst_114 = arith.constant 1.000000e+00 : f32
    %498 = vector.broadcast %cst_114 : f32 to vector<2x96xf32>
    %499 = arith.addf %498, %497 : vector<2x96xf32>
    %500 = arith.divf %498, %499 : vector<2x96xf32>
    %501 = vector.extract_strided_slice %494 {offsets = [0, 96], sizes = [2, 32], strides = [1, 1]} : vector<2x128xf32> to vector<2x32xf32>
    %502 = math.tanh %501 : vector<2x32xf32>
    %503 = vector.extract_strided_slice %500 {offsets = [0, 0], sizes = [2, 32], strides = [1, 1]} : vector<2x96xf32> to vector<2x32xf32>
    %504 = vector.extract_strided_slice %500 {offsets = [0, 32], sizes = [2, 32], strides = [1, 1]} : vector<2x96xf32> to vector<2x32xf32>
    %505 = vector.extract_strided_slice %500 {offsets = [0, 64], sizes = [2, 32], strides = [1, 1]} : vector<2x96xf32> to vector<2x32xf32>
    %506 = arith.mulf %504, %489 : vector<2x32xf32>
    %507 = arith.mulf %503, %502 : vector<2x32xf32>
    %508 = arith.addf %506, %507 : vector<2x32xf32>
    %509 = math.tanh %508 : vector<2x32xf32>
    %510 = arith.mulf %505, %509 : vector<2x32xf32>
    %c2_115 = arith.constant 2 : index
    %c0_116 = arith.constant 0 : index
    %c0_117 = arith.constant 0 : index
    %511 = vector.load %arg15[%c2_115, %c0_116, %c0_117] : memref<3x2x32xf32, #tpu.memory_space<vmem>>, vector<1x2x32xf32>
    %512 = vector.shape_cast %511 : vector<1x2x32xf32> to vector<2x32xf32>
    %513 = vector.shape_cast %510 : vector<2x32xf32> to vector<1x2x32xf32>
    tpu.vector_store %arg15[%c2_115, %c0_116, %c0_117], %513 {strides = array<i32>} : memref<3x2x32xf32, #tpu.memory_space<vmem>>, vector<1x2x32xf32>,
    %c2_118 = arith.constant 2 : index
    %c0_119 = arith.constant 0 : index
    %c0_120 = arith.constant 0 : index
    %514 = vector.load %arg16[%c2_118, %c0_119, %c0_120] : memref<3x2x32xf32, #tpu.memory_space<vmem>>, vector<1x2x32xf32>
    %515 = vector.shape_cast %514 : vector<1x2x32xf32> to vector<2x32xf32>
    %516 = vector.shape_cast %508 : vector<2x32xf32> to vector<1x2x32xf32>
    tpu.vector_store %arg16[%c2_118, %c0_119, %c0_120], %516 {strides = array<i32>} : memref<3x2x32xf32, #tpu.memory_space<vmem>>, vector<1x2x32xf32>,
    %c0_121 = arith.constant 0 : index
    %c0_122 = arith.constant 0 : index
    %517 = vector.load %arg10[%c0_121, %c0_122] : memref<32x32xf32, #tpu.memory_space<vmem>>, vector<32x32xf32>
    %cst_123 = arith.constant dense<0.000000e+00> : vector<2x32xf32>
    %518 = tpu.matmul %510, %517, %cst_123 {dimension_numbers = #tpu.dot_dimension_numbers<[1], [0], [0], [1], [0, 0, 1, 1], [], []>} : vector<2x32xf32>, vector<32x32xf32>, vector<2x32xf32> -> vector<2x32xf32>
    %c0_124 = arith.constant 0 : index
    %c0_125 = arith.constant 0 : index
    %519 = vector.load %arg11[%c0_124, %c0_125] : memref<1x32xf32, #tpu.memory_space<vmem>>, vector<1x32xf32>
    %520 = vector.broadcast %519 : vector<1x32xf32> to vector<2x32xf32>
    %521 = arith.addf %518, %520 : vector<2x32xf32>
    %cst_126 = arith.constant 0.000000e+00 : f32
    %522 = vector.broadcast %cst_126 : f32 to vector<2x32xf32>
    %523 = arith.maximumf %521, %522 : vector<2x32xf32>
    %c0_127 = arith.constant 0 : index
    %c0_128 = arith.constant 0 : index
    %524 = vector.load %arg12[%c0_127, %c0_128] : memref<32x48xf32, #tpu.memory_space<vmem>>, vector<32x48xf32>
    %cst_129 = arith.constant dense<0.000000e+00> : vector<2x48xf32>
    %525 = tpu.matmul %523, %524, %cst_129 {dimension_numbers = #tpu.dot_dimension_numbers<[1], [0], [0], [1], [0, 0, 1, 1], [], []>} : vector<2x32xf32>, vector<32x48xf32>, vector<2x48xf32> -> vector<2x48xf32>
    %c0_130 = arith.constant 0 : index
    %c0_131 = arith.constant 0 : index
    %526 = vector.load %arg13[%c0_130, %c0_131] : memref<1x48xf32, #tpu.memory_space<vmem>>, vector<1x48xf32>
    %527 = vector.broadcast %526 : vector<1x48xf32> to vector<2x48xf32>
    %528 = arith.addf %525, %527 : vector<2x48xf32>
    %c0_132 = arith.constant 0 : index
    %c0_133 = arith.constant 0 : index
    %529 = vector.load %arg14[%c0_132, %c0_133] : memref<2x48xf32, #tpu.memory_space<vmem>>, vector<2x48xf32>
    tpu.vector_store %arg14[%c0_132, %c0_133], %528 {strides = array<i32>} : memref<2x48xf32, #tpu.memory_space<vmem>>, vector<2x48xf32>,
    return
  }
}

</mosaic_0001>

<bundles_post_ra>
// kernel: tpu_custom_call.1
= control target key start
LH: loop header
LB: loop body
LE: loop exit
PB: predicated region body
PF: predicated region fallthrough
CT: control target
= control target key end

     0   :  { %s5170_s0 = inlined_call_operand.hbm [shape: f32[16,16], index: 0, kind: input, shape index: {}]   ;;  %s5171_s1 = inlined_call_operand.hbm [shape: f32[16,128], index: 1, kind: input, shape index: {}]   ;;  %s5172_s2 = inlined_call_operand.hbm [shape: f32[32,128], index: 2, kind: input, shape index: {}]   ;;  %s5173_s3 = inlined_call_operand.vmem [shape: f32[1,128], index: 3, kind: input, shape index: {}]   ;;  %s5174_s4 = inlined_call_operand.hbm [shape: f32[32,128], index: 4, kind: input, shape index: {}]   ;;  %s5175_s5 = inlined_call_operand.hbm [shape: f32[32,128], index: 5, kind: input, shape index: {}]   ;;  %s5176_s6 = inlined_call_operand.vmem [shape: f32[1,128], index: 6, kind: input, shape index: {}]   ;;  %s5177_s7 = inlined_call_operand.hbm [shape: f32[32,128], index: 7, kind: input, shape index: {}]   ;;  %s5178_s8 = inlined_call_operand.hbm [shape: f32[32,128], index: 8, kind: input, shape index: {}]   ;;  %s5179_s9 = inlined_call_operand.vmem [shape: f32[1,128], index: 9, kind: input, shape index: {}]   ;;  %s5180_s10 = inlined_call_operand.vmem [shape: f32[32,32], index: 10, kind: input, shape index: {}]   ;;  %s5181_s11 = inlined_call_operand.vmem [shape: f32[1,32], index: 11, kind: input, shape index: {}]   ;;  %s5182_s12 = inlined_call_operand.hbm [shape: f32[32,48], index: 12, kind: input, shape index: {}]   ;;  %s5183_s13 = inlined_call_operand.vmem [shape: f32[1,48], index: 13, kind: input, shape index: {}]   ;;  %s5184_s14 = inlined_call_operand.hbm [shape: f32[2,48], index: 14, kind: output, shape index: {0}]   ;;  %s5185_s15 = inlined_call_operand.hbm [shape: f32[3,2,32], index: 15, kind: output, shape index: {1}]   ;;  %s5186_s16 = inlined_call_operand.hbm [shape: f32[3,2,32], index: 16, kind: output, shape index: {2}]  }
   0x1   :  { %5188 = sst [smem:[#allocation28_spill]] %s5170_s0 }
   0x2   :  { %22 = vsyncpa [#allocation4], 0 }
   0x3   :  { %23 = vsyncpa [#allocation7], 0 }
   0x4   :  { %24 = vsyncpa [#allocation10], 0 }
   0x5   :  { %25 = vsyncpa [#allocation13], 0 }
   0x6   :  { %26 = vsyncpa [#allocation16], 0 }
   0x7   :  { %27 = vsyncpa [#allocation5], 0 }
   0x8   :  { %28 = vsyncpa [#allocation19], 0  ;;  %s4449_s21 = smov [#allocation6]   ;;  %s4450_s23 = smov [#allocation9]  }
   0x9   :  { %s46_s22 = sshll.u32 %s4449_s21, 4  ;;  %s72_s24 = sshll.u32 %s4450_s23, 4  ;;  %s47_s22 = int_to_ptr.vmem [resolvable:$true] %s46_s22  ;;  %s4554_s24 = int_to_ptr.vmem [resolvable:$true] %s72_s24 }
   0xa   :  { %s4193_s27 = scalar_lea.hbm %s5171_s1, 256 }
   0xb   :  { %p4194_p0 = scmp.ne.s32.totalorder %s5171_s1, %s4193_s27  ;;  %p4197_p1 = scmp.lt.u32.totalorder %s4193_s27, %s5171_s1 }
   0xd   :  { %p4199_p2 = pnand %p4197_p1, %p4194_p0 }
   0xf   :  { %4202 = shalt.err (!%p4199_p2)
}
  0x10   :  { %s4203_s17 = scalar_lea.vmem %s47_s22, 256  ;;  %p4208_p4 = scmp.lt.s32.totalorder %s47_s22, %s47_s22 }
  0x11   :  { %p4204_p3 = scmp.ne.s32.totalorder %s47_s22, %s4203_s17  ;;  %p4209_p5 = scmp.lt.s32.totalorder %s4203_s17, %s4203_s17 }
  0x13   :  { %p4210_p6 = por %p4209_p5, %p4208_p4 }
  0x15   :  { %p4211_p7 = pnand %p4210_p6, %p4204_p3 }
  0x17   :  { %4214 = shalt.err (!%p4211_p7)
}
  0x18   :  { %s4451_s18 = smov 128   ;;  %s4452_s19 = smov 8  }
  0x19   :  { %52 = dma.hbm_to_vmem [thread:$0]  %s5171_s1, 256, %s47_s22, [#allocation7], %s4451_s18, %s4451_s18, %s4452_s19  }
  0x1a   :  { %s4215_s26 = scalar_lea.hbm %s5174_s4, 512 }
  0x1b   :  { %p4216_p8 = scmp.ne.s32.totalorder %s5174_s4, %s4215_s26  ;;  %p4219_p9 = scmp.lt.u32.totalorder %s4215_s26, %s5174_s4 }
  0x1d   :  { %p4221_p10 = pnand %p4219_p9, %p4216_p8 }
  0x1f   :  { %4224 = shalt.err (!%p4221_p10)
}
  0x20   :  { %s4225_s0 = scalar_lea.vmem %s4554_s24, 512  ;;  %p4230_p12 = scmp.lt.s32.totalorder %s4554_s24, %s4554_s24 }
  0x21   :  { %p4226_p11 = scmp.ne.s32.totalorder %s4554_s24, %s4225_s0  ;;  %p4231_p13 = scmp.lt.s32.totalorder %s4225_s0, %s4225_s0 }
  0x23   :  { %p4232_p0 = por %p4231_p13, %p4230_p12 }
  0x25   :  { %p4233_p1 = pnand %p4232_p0, %p4226_p11 }
  0x27   :  { %4236 = shalt.err (!%p4233_p1)
}
  0x28   :  { %78 = dma.hbm_to_vmem [thread:$0]  %s5174_s4, 512, %s4554_s24, [#allocation10], %s4451_s18, %s4451_s18, %s4452_s19  }
  0x29   :  { %s4453_s17 = smov [#allocation12]   ;;  %s4454_s21 = smov [#allocation3]  }
  0x2a   :  { %s98_s20 = sshll.u32 %s4453_s17, 4  ;;  %s34_s23 = sshll.u32 %s4454_s21, 4  ;;  %s99_s20 = int_to_ptr.vmem [resolvable:$true] %s98_s20  ;;  %s4591_s23 = int_to_ptr.vmem [resolvable:$true] %s34_s23 }
  0x2b   :  { %s4237_s27 = scalar_lea.hbm %s5177_s7, 512 }
  0x2c   :  { %p4238_p2 = scmp.ne.s32.totalorder %s5177_s7, %s4237_s27  ;;  %p4241_p3 = scmp.lt.u32.totalorder %s4237_s27, %s5177_s7 }
  0x2e   :  { %p4243_p4 = pnand %p4241_p3, %p4238_p2 }
  0x30   :  { %4246 = shalt.err (!%p4243_p4)
}
  0x31   :  { %s4247_s4 = scalar_lea.vmem %s99_s20, 512  ;;  %p4252_p6 = scmp.lt.s32.totalorder %s99_s20, %s99_s20 }
  0x32   :  { %p4248_p5 = scmp.ne.s32.totalorder %s99_s20, %s4247_s4  ;;  %p4253_p7 = scmp.lt.s32.totalorder %s4247_s4, %s4247_s4 }
  0x34   :  { %p4254_p8 = por %p4253_p7, %p4252_p6 }
  0x36   :  { %p4255_p9 = pnand %p4254_p8, %p4248_p5 }
  0x38   :  { %4258 = shalt.err (!%p4255_p9)
}
  0x39   :  { %104 = dma.hbm_to_vmem [thread:$0]  %s5177_s7, 512, %s99_s20, [#allocation13], %s4451_s18, %s4451_s18, %s4452_s19  }
  0x3a   :  { %s5189_s21 = sld [smem:[#allocation28_spill]] }
  0x40   :  { %s4259_s25 = scalar_lea.hbm %s5189_s21, 256 }
  0x41   :  { %p4260_p10 = scmp.ne.s32.totalorder %s5189_s21, %s4259_s25  ;;  %p4263_p11 = scmp.lt.u32.totalorder %s4259_s25, %s5189_s21 }
  0x43   :  { %p4265_p12 = pnand %p4263_p11, %p4260_p10 }
  0x45   :  { %4268 = shalt.err (!%p4265_p12)
}
  0x46   :  { %s4269_s30 = scalar_lea.vmem %s4591_s23, 256  ;;  %p4274_p0 = scmp.lt.s32.totalorder %s4591_s23, %s4591_s23 }
  0x47   :  { %p4270_p13 = scmp.ne.s32.totalorder %s4591_s23, %s4269_s30  ;;  %p4275_p1 = scmp.lt.s32.totalorder %s4269_s30, %s4269_s30 }
  0x49   :  { %p4276_p2 = por %p4275_p1, %p4274_p0 }
  0x4b   :  { %p4277_p3 = pnand %p4276_p2, %p4270_p13 }
  0x4d   :  { %4280 = shalt.err (!%p4277_p3)
}
  0x4e   :  { %40 = dma.hbm_to_vmem [thread:$0]  %s5189_s21, 256, %s4591_s23, [#allocation4], %s4451_s18, %s4451_s18, %s4452_s19  }
  0x4f   :  { %s4455_s0 = smov [#allocation8]   ;;  %s4456_s24 = smov [#allocation11]  }
  0x50   :  { %s58_s4 = sshll.u32 %s4455_s0, 4  ;;  %s84_s1 = sshll.u32 %s4456_s24, 4  ;;  %s59_s4 = int_to_ptr.vmem [resolvable:$true] %s58_s4  ;;  %s4628_s1 = int_to_ptr.vmem [resolvable:$true] %s84_s1 }
  0x51   :  { %s4281_s25 = scalar_lea.hbm %s5172_s2, 512 }
  0x52   :  { %p4282_p4 = scmp.ne.s32.totalorder %s5172_s2, %s4281_s25  ;;  %p4285_p5 = scmp.lt.u32.totalorder %s4281_s25, %s5172_s2 }
  0x54   :  { %p4287_p6 = pnand %p4285_p5, %p4282_p4 }
  0x56   :  { %4290 = shalt.err (!%p4287_p6)
}
  0x57   :  { %s4291_s23 = scalar_lea.vmem %s59_s4, 512  ;;  %p4296_p8 = scmp.lt.s32.totalorder %s59_s4, %s59_s4 }
  0x58   :  { %p4292_p7 = scmp.ne.s32.totalorder %s59_s4, %s4291_s23  ;;  %p4297_p9 = scmp.lt.s32.totalorder %s4291_s23, %s4291_s23 }
  0x5a   :  { %p4298_p10 = por %p4297_p9, %p4296_p8 }
  0x5c   :  { %p4299_p11 = pnand %p4298_p10, %p4292_p7 }
  0x5e   :  { %4302 = shalt.err (!%p4299_p11)
}
  0x5f   :  { %64 = dma.hbm_to_vmem [thread:$0]  %s5172_s2, 512, %s59_s4, [#allocation7], %s4451_s18, %s4451_s18, %s4452_s19  }
  0x60   :  { %s4303_s0 = scalar_lea.hbm %s5175_s5, 512 }
  0x61   :  { %p4304_p12 = scmp.ne.s32.totalorder %s5175_s5, %s4303_s0  ;;  %p4307_p13 = scmp.lt.u32.totalorder %s4303_s0, %s5175_s5 }
  0x63   :  { %p4309_p0 = pnand %p4307_p13, %p4304_p12 }
  0x65   :  { %4312 = shalt.err (!%p4309_p0)
}
  0x66   :  { %s4313_s26 = scalar_lea.vmem %s4628_s1, 512  ;;  %p4318_p2 = scmp.lt.s32.totalorder %s4628_s1, %s4628_s1 }
  0x67   :  { %p4314_p1 = scmp.ne.s32.totalorder %s4628_s1, %s4313_s26  ;;  %p4319_p3 = scmp.lt.s32.totalorder %s4313_s26, %s4313_s26 }
  0x69   :  { %p4320_p4 = por %p4319_p3, %p4318_p2 }
  0x6b   :  { %p4321_p5 = pnand %p4320_p4, %p4314_p1 }
  0x6d   :  { %4324 = shalt.err (!%p4321_p5)
}
  0x6e   :  { %90 = dma.hbm_to_vmem [thread:$0]  %s5175_s5, 512, %s4628_s1, [#allocation10], %s4451_s18, %s4451_s18, %s4452_s19  }
  0x6f   :  { %s4457_s27 = smov [#allocation14]   ;;  %s4458_s29 = smov [#allocation15]  }
  0x70   :  { %s110_s28 = sshll.u32 %s4457_s27, 4  ;;  %s128_s23 = sshll.u32 %s4458_s29, 4  ;;  %s111_s28 = int_to_ptr.vmem [resolvable:$true] %s110_s28  ;;  %s4665_s23 = int_to_ptr.vmem [resolvable:$true] %s128_s23 }
  0x71   :  { %s4325_s7 = scalar_lea.hbm %s5178_s8, 512 }
  0x72   :  { %p4326_p6 = scmp.ne.s32.totalorder %s5178_s8, %s4325_s7  ;;  %p4329_p7 = scmp.lt.u32.totalorder %s4325_s7, %s5178_s8 }
  0x74   :  { %p4331_p8 = pnand %p4329_p7, %p4326_p6 }
  0x76   :  { %4334 = shalt.err (!%p4331_p8)
}
  0x77   :  { %s4335_s5 = scalar_lea.vmem %s111_s28, 512  ;;  %p4340_p10 = scmp.lt.s32.totalorder %s111_s28, %s111_s28 }
  0x78   :  { %p4336_p9 = scmp.ne.s32.totalorder %s111_s28, %s4335_s5  ;;  %p4341_p11 = scmp.lt.s32.totalorder %s4335_s5, %s4335_s5 }
  0x7a   :  { %p4342_p12 = por %p4341_p11, %p4340_p10 }
  0x7c   :  { %p4343_p13 = pnand %p4342_p12, %p4336_p9 }
  0x7e   :  { %4346 = shalt.err (!%p4343_p13)
}
  0x7f   :  { %116 = dma.hbm_to_vmem [thread:$0]  %s5178_s8, 512, %s111_s28, [#allocation13], %s4451_s18, %s4451_s18, %s4452_s19  }
  0x80   :  { %s4347_s2 = scalar_lea.hbm %s5182_s12, 512 }
  0x81   :  { %p4348_p0 = scmp.ne.s32.totalorder %s5182_s12, %s4347_s2  ;;  %p4351_p1 = scmp.lt.u32.totalorder %s4347_s2, %s5182_s12 }
  0x83   :  { %p4353_p2 = pnand %p4351_p1, %p4348_p0 }
  0x85   :  { %4356 = shalt.err (!%p4353_p2)
}
  0x86   :  { %s4357_s30 = scalar_lea.vmem %s4665_s23, 512  ;;  %p4362_p4 = scmp.lt.s32.totalorder %s4665_s23, %s4665_s23 }
  0x87   :  { %p4358_p3 = scmp.ne.s32.totalorder %s4665_s23, %s4357_s30  ;;  %p4363_p5 = scmp.lt.s32.totalorder %s4357_s30, %s4357_s30 }
  0x89   :  { %p4364_p6 = por %p4363_p5, %p4362_p4 }
  0x8b   :  { %p4365_p7 = pnand %p4364_p6, %p4358_p3 }
  0x8d   :  { %4368 = shalt.err (!%p4365_p7)
}
  0x8e   :  { %134 = dma.hbm_to_vmem [thread:$0]  %s5182_s12, 512, %s4665_s23, [#allocation16], %s4451_s18, %s4451_s18, %s4452_s19  }
  0x8f   :  { %4435 = dma.done.wait [#allocation4], 256  }
  0x90   :  { %4436 = vsyncadd [#allocation4], 4294967040 }
  0x91   :  { %4437 = dma.done.wait [#allocation7], 768  }
  0x92   :  { %4438 = vsyncadd [#allocation7], 4294966528 }
  0x93   :  { %4439 = dma.done.wait [#allocation10], 1024  }
  0x94   :  { %4440 = vsyncadd [#allocation10], 4294966272 }
  0x95   :  { %4441 = dma.done.wait [#allocation13], 1024  }
  0x96   :  { %4442 = vsyncadd [#allocation13], 4294966272 }
  0x97   :  { %4443 = dma.done.wait [#allocation16], 512  }
  0x98   :  { %4444 = vsyncadd [#allocation16], 4294966784  ;;  %v4459_v0 = vmov 0.0|0.0   ;;  %vm4460_vm0 = vmmov 0   ;;  %v4461_v1 = vmov 0.0   ;;  %vm172_vm1 = vcmask 130048  }
  0x99   :  { %3809 = vmatprep.subr.bf16.mxu1 %v4459_v0  ;;  %3505 = vmatprep.mubr.msk.f32.mxu1 %vm4460_vm0, %v4461_v1  ;;  %v163_v2 = vld [vmem:[#allocation6] sm:$0xff]  ;;  %v164_v3 = vld [vmem:[#allocation6 + $0x8] sm:$0xff]  ;;  %v254_v4 = vld [vmem:[#allocation8] sm:$0xff]  ;;  %s4462_s19 = smov 32   ;;  %vm361_vm2 = vcmask 254976   ;;  %vm258_vm3 = vcmask 261120  }
  0x9a   :  { %v3805_v5 = vpack.c.bf16 %v164_v3, %v163_v2  ;;  %v255_v6 = vld [vmem:[#allocation8 + $0x8] sm:$0xff]  ;;  %v161_v7 = vld [vmem:[#allocation3] sm:$0xff]  ;;  %v256_v9 = vld [vmem:[#allocation8 + $0x10] sm:$0xff]  ;;  %vm470_vm4 = vcmask 257026   ;;  %vm694_vm5 = vcmask 261126   ;;  %vm582_vm6 = vcmask 259076  }
  0x9b   :  { %v4705_v8 = vpack.c.bf16 %v255_v6, %v254_v4  ;;  %3494 = vmatprep.mubr.msk.f32.mxu0 %vm172_vm1, %v161_v7  ;;  %v257_v10 = vld [vmem:[#allocation8 + $0x18] sm:$0xff]  ;;  %v162_v11 = vld [vmem:[#allocation3 + $0x8] sm:$0xff]  ;;  %v3286_v13 = vld [vmem:[%s5173_s3] ss:$0 sm:$0xff]  ;;  %s4463_s3 = smov 64   ;;  %s4464_s26 = smov 96  }
  0x9c   :  { %3806 = vmatprep.subr.bf16.mxu0 %v3805_v5  ;;  %v4709_v12 = vpack.c.bf16 %v257_v10, %v256_v9  ;;  %s4465_s4 = smov [#allocation18]  }
  0x9d   :  { %3811 = vmatpush3.bf16.msra.mxu1 %v4705_v8  ;;  %3808 = vmatpush3.bf16.msra.mxu0 %v3805_v5  ;;  %s3251_s27 = sshll.u32 %s4465_s4, 4  ;;  %s3252_s27 = int_to_ptr.vmem [resolvable:$true] %s3251_s27 }
  0x9e   :  { %3812 = vmatprep.subr.bf16.mxu1 %v4459_v0  ;;  %3815 = vmatprep.subr.bf16.mxu0 %v4459_v0  ;;  %s4369_s29 = scalar_lea.vmem %s3252_s27, 96  ;;  %p4374_p9 = scmp.lt.s32.totalorder %s3252_s27, %s3252_s27 }
  0x9f   :  { %p4370_p8 = scmp.ne.s32.totalorder %s3252_s27, %s4369_s29  ;;  %p4375_p10 = scmp.lt.s32.totalorder %s4369_s29, %s4369_s29 }
  0xa0   :  { %3495 = vmatmul.mubr.msk.f32.vlgmr.msra.gmra.mrb[0].mxu0 %vm172_vm1, %v162_v11 }
  0xa1   :  { %3814 = vmatpush3.bf16.msra.mxu1 %v4709_v12  ;;  %3817 = vmatpush3.bf16.msra.mxu0 %v4705_v8  ;;  %p4376_p11 = por %p4375_p10, %p4374_p9 }
  0xa2   :  { %3818 = vmatprep.subr.bf16.mxu0 %v4459_v0  ;;  %3516 = vmatprep.mubr.msk.f32.mxu0 %vm4460_vm0, %v4461_v1 }
  0xa3   :  { %3821 = vmatprep.subr.bf16.mxu1 %v4459_v0  ;;  %p4377_p12 = pnand %p4376_p11, %p4370_p8 }
  0xa4   :  { %3506 = vmatmul.mubr.f32.vlgmr.msra.gmra.mrb[0].mxu1 %v4461_v1 }
  0xa5   :  { %3820 = vmatpush3.bf16.msra.mxu0 %v4709_v12  ;;  %3823 = vmatpush3.bf16.msra.mxu1 %v4705_v8 }
  0xa6   :  { %3824 = vmatprep.subr.bf16.mxu1 %v4459_v0  ;;  %3527 = vmatprep.mubr.msk.f32.mxu1 %vm4460_vm0, %v4461_v1 }
  0xa7   :  { %3827 = vmatprep.subr.bf16.mxu0 %v4459_v0 }
  0xa9   :  { %3826 = vmatpush3.bf16.msra.mxu1 %v4709_v12 }
  0xaa   :  { %3833 = vmatprep.subr.bf16.mxu1 %v4459_v0 }
 0x173   :  { %v3496_v14 = vpop.f32.mrb[0].mxu0 }
 0x174   :  { %v4732_v15 = vadd.f32 %v3496_v14, %v3286_v13  ;;  %v245_v16 = vpop.f32.mrb[1].mxu0 }
 0x175   :  { %v4734_v17 = vadd.f32 %v3286_v13, %v245_v16 }
 0x177   :  { %v328_v18 = vpop.f32.mrb[0].mxu1 }
 0x178   :  { %v332_v19 = vadd.f32 %v328_v18, %v4734_v17  ;;  %v3507_v20 = vpop.f32.mrb[1].mxu1 }
 0x17a   :  { %4001 = vtanh.f32 %v332_v19  ;;  %v3289_v22 = vmul.f32 -1.442695, %v332_v19 }
 0x17c   :  { %4003 = vpow2.f32 %v3289_v22 }
 0x184   :  { %v4002_v21 = vpop.eup %4001 }
 0x185   :  { %342 = vrot.lane.b32.xlu0 %v4002_v21, %s4462_s19 }
 0x186   :  { %v4004_v23 = vpop.eup %4003 }
 0x187   :  { %v336_v24 = vadd.f32 1.0, %v4004_v23 }
 0x189   :  { %4005 = vrcp.f32 %v336_v24 }
 0x193   :  { %v4006_v25 = vpop.eup %4005 }
 0x194   :  { %v340_v28 = vmul.f32 0.0, %v4006_v25 }
 0x1f7   :  { %v343_v26 = vpop.permute.xlu0 %342 }
 0x1f8   :  { %v345_v27 = vmul.f32 %v4006_v25, %v343_v26 }
 0x1fa   :  { %347 = vrot.lane.b32.xlu0 %v345_v27, %s4462_s19 }
 0x26c   :  { %v348_v29 = vpop.permute.xlu0 %347 }
 0x26d   :  { %v350_v30 = vadd.f32 %v348_v29, %v340_v28 }
 0x26f   :  { %4007 = vtanh.f32 %v350_v30  ;;  %v447_v46 = vrot.slane %v350_v30, 6 }
 0x279   :  { %v4008_v31 = vpop.eup %4007 }
 0x27a   :  { %353 = vrot.lane.b32.xlu1 %v4008_v31, %s4462_s19 }
 0x2ec   :  { %v354_v32 = vpop.permute.xlu1 %353 }
 0x2ed   :  { %v356_v33 = vmul.f32 %v4006_v25, %v354_v32 }
 0x2ef   :  { %358 = vrot.lane.b32.xlu1 %v356_v33, %s4463_s3 }
 0x361   :  { %v359_v34 = vpop.permute.xlu1 %358 }
 0x362   :  { %362 = vst.msk [vmem:[#allocation2] sm:$0x3] %vm361_vm2, %v359_v34  ;;  %3517 = vmatmul.mubr.msk.f32.vlgmr.msra.gmra.mrb[2].mxu0 %vm258_vm3, %v359_v34 }
 0x363   :  { %3829 = vmatpush3.bf16.msra.mxu0 %v4705_v8  ;;  %3538 = vmatprep.mubr.msk.f32.mxu0 %vm4460_vm0, %v4461_v1 }
 0x364   :  { %3830 = vmatprep.subr.bf16.mxu0 %v4459_v0 }
 0x367   :  { %3832 = vmatpush3.bf16.msra.mxu0 %v4709_v12 }
 0x368   :  { %3839 = vmatprep.subr.bf16.mxu0 %v4459_v0 }
 0x435   :  { %v431_v35 = vpop.f32.mrb[2].mxu0 }
 0x436   :  { %v436_v36 = vrot.slane %v431_v35, 6  ;;  %v3518_v37 = vpop.f32.mrb[3].mxu0 }
 0x438   :  { %v438_v38 = vadd.f32 %v436_v36, %v4734_v17 }
 0x43a   :  { %4009 = vtanh.f32 %v438_v38  ;;  %v3291_v40 = vmul.f32 -1.442695, %v438_v38 }
 0x43c   :  { %4011 = vpow2.f32 %v3291_v40 }
 0x444   :  { %v4010_v39 = vpop.eup %4009 }
 0x445   :  { %451 = vrot.lane.b32.xlu0 %v4010_v39, %s4462_s19 }
 0x446   :  { %v4012_v41 = vpop.eup %4011 }
 0x447   :  { %v442_v42 = vadd.f32 1.0, %v4012_v41 }
 0x449   :  { %4013 = vrcp.f32 %v442_v42 }
 0x453   :  { %v4014_v43 = vpop.eup %4013 }
 0x454   :  { %v449_v47 = vmul.f32 %v4014_v43, %v447_v46 }
 0x4b7   :  { %v452_v44 = vpop.permute.xlu0 %451 }
 0x4b8   :  { %v454_v45 = vmul.f32 %v4014_v43, %v452_v44 }
 0x4ba   :  { %456 = vrot.lane.b32.xlu1 %v454_v45, %s4462_s19 }
 0x52c   :  { %v457_v48 = vpop.permute.xlu1 %456 }
 0x52d   :  { %v459_v49 = vadd.f32 %v457_v48, %v449_v47 }
 0x52f   :  { %4015 = vtanh.f32 %v459_v49  ;;  %v559_v4 = vrot.slane %v459_v49, 6 }
 0x539   :  { %v4016_v50 = vpop.eup %4015 }
 0x53a   :  { %462 = vrot.lane.b32.xlu0 %v4016_v50, %s4462_s19 }
 0x5ac   :  { %v463_v51 = vpop.permute.xlu0 %462 }
 0x5ad   :  { %v4753_v52 = vmul.f32 %v4014_v43, %v463_v51 }
 0x5af   :  { %v472_v53 = vrot.slane %v4753_v52, 2 }
 0x5b1   :  { %473 = vrot.lane.b32.xlu1 %v472_v53, %s4463_s3 }
 0x623   :  { %v474_v54 = vpop.permute.xlu1 %473 }
 0x624   :  { %3528 = vmatmul.mubr.msk.f32.vlgmr.msra.gmra.mrb[2].mxu1 %vm258_vm3, %v474_v54 }
 0x625   :  { %3835 = vmatpush3.bf16.msra.mxu1 %v4705_v8  ;;  %3549 = vmatprep.mubr.msk.f32.mxu1 %vm4460_vm0, %v4461_v1 }
 0x626   :  { %3836 = vmatprep.subr.bf16.mxu1 %v4459_v0 }
 0x629   :  { %3838 = vmatpush3.bf16.msra.mxu1 %v4709_v12 }
 0x62a   :  { %3845 = vmatprep.subr.bf16.mxu1 %v4459_v0 }
 0x6f7   :  { %v543_v55 = vpop.f32.mrb[2].mxu1 }
 0x6f8   :  { %v548_v56 = vrot.slane %v543_v55, 4  ;;  %v3529_v57 = vpop.f32.mrb[3].mxu1 }
 0x6fa   :  { %v550_v58 = vadd.f32 %v548_v56, %v4734_v17 }
 0x6fc   :  { %4017 = vtanh.f32 %v550_v58  ;;  %v3293_v60 = vmul.f32 -1.442695, %v550_v58 }
 0x6fe   :  { %4019 = vpow2.f32 %v3293_v60 }
 0x706   :  { %v4018_v59 = vpop.eup %4017 }
 0x707   :  { %563 = vrot.lane.b32.xlu0 %v4018_v59, %s4462_s19 }
 0x708   :  { %v4020_v61 = vpop.eup %4019 }
 0x709   :  { %v554_v62 = vadd.f32 1.0, %v4020_v61 }
 0x70b   :  { %4021 = vrcp.f32 %v554_v62 }
 0x715   :  { %v4022_v63 = vpop.eup %4021 }
 0x716   :  { %v561_v5 = vmul.f32 %v4022_v63, %v559_v4 }
 0x779   :  { %v564_v2 = vpop.permute.xlu0 %563 }
 0x77a   :  { %v566_v3 = vmul.f32 %v4022_v63, %v564_v2 }
 0x77c   :  { %568 = vrot.lane.b32.xlu1 %v566_v3, %s4462_s19 }
 0x7ee   :  { %v569_v6 = vpop.permute.xlu1 %568 }
 0x7ef   :  { %v571_v7 = vadd.f32 %v569_v6, %v561_v5 }
 0x7f1   :  { %4023 = vtanh.f32 %v571_v7  ;;  %v671_v28 = vrot.slane %v571_v7, 6 }
 0x7fb   :  { %v4024_v9 = vpop.eup %4023 }
 0x7fc   :  { %574 = vrot.lane.b32.xlu0 %v4024_v9, %s4462_s19 }
 0x86e   :  { %v575_v10 = vpop.permute.xlu0 %574 }
 0x86f   :  { %v4768_v11 = vmul.f32 %v4022_v63, %v575_v10 }
 0x871   :  { %v584_v13 = vrot.slane %v4768_v11, 4 }
 0x873   :  { %585 = vrot.lane.b32.xlu1 %v584_v13, %s4463_s3 }
 0x8e5   :  { %v586_v14 = vpop.permute.xlu1 %585 }
 0x8e6   :  { %3539 = vmatmul.mubr.msk.f32.vlgmr.msra.gmra.mrb[4].mxu0 %vm258_vm3, %v586_v14 }
 0x8e7   :  { %3841 = vmatpush3.bf16.msra.mxu0 %v4705_v8  ;;  %3560 = vmatprep.mubr.msk.f32.mxu0 %vm4460_vm0, %v4461_v1 }
 0x8e8   :  { %3842 = vmatprep.subr.bf16.mxu0 %v4459_v0 }
 0x8eb   :  { %3844 = vmatpush3.bf16.msra.mxu0 %v4709_v12 }
 0x8ec   :  { %3851 = vmatprep.subr.bf16.mxu0 %v4459_v0 }
 0x9b9   :  { %v655_v16 = vpop.f32.mrb[4].mxu0 }
 0x9ba   :  { %v660_v18 = vrot.slane %v655_v16, 2  ;;  %v3540_v19 = vpop.f32.mrb[5].mxu0 }
 0x9bc   :  { %v662_v20 = vadd.f32 %v660_v18, %v4734_v17 }
 0x9be   :  { %4025 = vtanh.f32 %v662_v20  ;;  %v3295_v22 = vmul.f32 -1.442695, %v662_v20 }
 0x9c0   :  { %4027 = vpow2.f32 %v3295_v22 }
 0x9c8   :  { %v4026_v21 = vpop.eup %4025 }
 0x9c9   :  { %675 = vrot.lane.b32.xlu0 %v4026_v21, %s4462_s19 }
 0x9ca   :  { %v4028_v23 = vpop.eup %4027 }
 0x9cb   :  { %v666_v24 = vadd.f32 1.0, %v4028_v23 }
 0x9cd   :  { %4029 = vrcp.f32 %v666_v24 }
 0x9d7   :  { %v4030_v25 = vpop.eup %4029 }
 0x9d8   :  { %v673_v29 = vmul.f32 %v4030_v25, %v671_v28 }
 0xa3b   :  { %v676_v26 = vpop.permute.xlu0 %675 }
 0xa3c   :  { %v678_v27 = vmul.f32 %v4030_v25, %v676_v26 }
 0xa3e   :  { %680 = vrot.lane.b32.xlu1 %v678_v27, %s4462_s19 }
 0xab0   :  { %v681_v30 = vpop.permute.xlu1 %680 }
 0xab1   :  { %v683_v31 = vadd.f32 %v681_v30, %v673_v29 }
 0xab3   :  { %4031 = vtanh.f32 %v683_v31  ;;  %v780_v46 = vrot.slane %v683_v31, 6 }
 0xabd   :  { %v4032_v17 = vpop.eup %4031 }
 0xabe   :  { %686 = vrot.lane.b32.xlu0 %v4032_v17, %s4462_s19 }
 0xb30   :  { %v687_v32 = vpop.permute.xlu0 %686 }
 0xb31   :  { %v4783_v33 = vmul.f32 %v4030_v25, %v687_v32 }
 0xb33   :  { %v696_v34 = vrot.slane %v4783_v33, 6 }
 0xb35   :  { %697 = vrot.lane.b32.xlu1 %v696_v34, %s4463_s3 }
 0xba7   :  { %v698_v35 = vpop.permute.xlu1 %697 }
 0xba8   :  { %3550 = vmatmul.mubr.msk.f32.vlgmr.msra.gmra.mrb[4].mxu1 %vm258_vm3, %v698_v35 }
 0xba9   :  { %3847 = vmatpush3.bf16.msra.mxu1 %v4705_v8  ;;  %3571 = vmatprep.mubr.msk.f32.mxu1 %vm4460_vm0, %v4461_v1 }
 0xbaa   :  { %3848 = vmatprep.subr.bf16.mxu1 %v4459_v0 }
 0xbad   :  { %3850 = vmatpush3.bf16.msra.mxu1 %v4709_v12 }
 0xc7b   :  { %v767_v36 = vpop.f32.mrb[4].mxu1 }
 0xc7c   :  { %v771_v37 = vadd.f32 %v767_v36, %v4732_v15  ;;  %v3551_v38 = vpop.f32.mrb[5].mxu1 }
 0xc7e   :  { %4033 = vtanh.f32 %v771_v37  ;;  %v3297_v40 = vmul.f32 -1.442695, %v771_v37 }
 0xc80   :  { %4035 = vpow2.f32 %v3297_v40 }
 0xc88   :  { %v4034_v39 = vpop.eup %4033 }
 0xc89   :  { %784 = vrot.lane.b32.xlu0 %v4034_v39, %s4462_s19 }
 0xc8a   :  { %v4036_v41 = vpop.eup %4035 }
 0xc8b   :  { %v775_v42 = vadd.f32 1.0, %v4036_v41 }
 0xc8d   :  { %4037 = vrcp.f32 %v775_v42 }
 0xc97   :  { %v4038_v43 = vpop.eup %4037 }
 0xc98   :  { %v782_v47 = vmul.f32 %v4038_v43, %v780_v46 }
 0xcfb   :  { %v785_v44 = vpop.permute.xlu0 %784 }
 0xcfc   :  { %v787_v45 = vmul.f32 %v4038_v43, %v785_v44 }
 0xcfe   :  { %789 = vrot.lane.b32.xlu1 %v787_v45, %s4462_s19 }
 0xd70   :  { %v790_v48 = vpop.permute.xlu1 %789 }
 0xd71   :  { %v792_v49 = vadd.f32 %v790_v48, %v782_v47 }
 0xd73   :  { %4039 = vtanh.f32 %v792_v49 }
 0xd7d   :  { %v4040_v50 = vpop.eup %4039 }
 0xd7e   :  { %795 = vrot.lane.b32.xlu0 %v4040_v50, %s4462_s19 }
 0xdf0   :  { %v796_v51 = vpop.permute.xlu0 %795 }
 0xdf1   :  { %v798_v53 = vmul.f32 %v4038_v43, %v796_v51 }
 0xdf3   :  { %800 = vrot.lane.b32.xlu1 %v798_v53, %s4463_s3  ;;  %v1142_v53 = vld [vmem:[#allocation9] sm:$0xff] }
 0xe65   :  { %v801_v54 = vpop.permute.xlu1 %800 }
 0xe66   :  { %803 = vst.msk [vmem:[#allocation2 + $0x8] sm:$0x3] %vm361_vm2, %v801_v54  ;;  %3561 = vmatmul.mubr.msk.f32.vlgmr.msra.gmra.mrb[6].mxu0 %vm258_vm3, %v801_v54  ;;  %v1143_v54 = vld [vmem:[#allocation9 + $0x8] sm:$0xff] }
 0xe67   :  { %3853 = vmatpush3.bf16.msra.mxu0 %v4705_v8  ;;  %3582 = vmatprep.mubr.msk.f32.mxu0 %vm4460_vm0, %v4461_v1 }
 0xe68   :  { %3854 = vmatprep.subr.bf16.mxu0 %v4459_v0 }
 0xe6b   :  { %3856 = vmatpush3.bf16.msra.mxu0 %v4709_v12  ;;  %v888_v12 = vrot.slane %v792_v49, 6 }
 0xe6c   :  { %3865 = vmatprep.subr.bf16.mxu0 %v4459_v0 }
 0xf39   :  { %v872_v55 = vpop.f32.mrb[6].mxu0 }
 0xf3a   :  { %v877_v56 = vrot.slane %v872_v55, 6  ;;  %v3562_v57 = vpop.f32.mrb[7].mxu0  ;;  %v3857_v55 = vpack.c.bf16 %v1143_v54, %v1142_v53 }
 0xf3b   :  { %v1235_v57 = vld [vmem:[#allocation11 + $0x8] sm:$0xff] }
 0xf3c   :  { %v879_v58 = vadd.f32 %v877_v56, %v4732_v15  ;;  %3858 = vmatprep.subr.bf16.mxu1 %v3857_v55  ;;  %v1234_v56 = vld [vmem:[#allocation11] sm:$0xff] }
 0xf3e   :  { %4041 = vtanh.f32 %v879_v58  ;;  %v3299_v60 = vmul.f32 -1.442695, %v879_v58  ;;  %v1144_v58 = vld [vmem:[#allocation9 + $0x10] sm:$0xff] }
 0xf40   :  { %4043 = vpow2.f32 %v3299_v60  ;;  %v1145_v60 = vld [vmem:[#allocation9 + $0x18] sm:$0xff] }
 0xf48   :  { %v4042_v59 = vpop.eup %4041 }
 0xf49   :  { %892 = vrot.lane.b32.xlu0 %v4042_v59, %s4462_s19  ;;  %v4842_v59 = vpack.c.bf16 %v1235_v57, %v1234_v56 }
 0xf4a   :  { %v4044_v8 = vpop.eup %4043 }
 0xf4b   :  { %v883_v61 = vadd.f32 1.0, %v4044_v8  ;;  %v1236_v8 = vld [vmem:[#allocation11 + $0x10] sm:$0xff] }
 0xf4d   :  { %4045 = vrcp.f32 %v883_v61  ;;  %v1237_v61 = vld [vmem:[#allocation11 + $0x18] sm:$0xff] }
 0xf57   :  { %v4046_v62 = vpop.eup %4045 }
 0xf58   :  { %v890_v3 = vmul.f32 %v4046_v62, %v888_v12 }
 0xfbb   :  { %v893_v63 = vpop.permute.xlu0 %892 }
 0xfbc   :  { %v895_v2 = vmul.f32 %v4046_v62, %v893_v63 }
 0xfbe   :  { %897 = vrot.lane.b32.xlu1 %v895_v2, %s4462_s19 }
0x1030   :  { %v898_v4 = vpop.permute.xlu1 %897 }
0x1031   :  { %v900_v5 = vadd.f32 %v898_v4, %v890_v3 }
0x1033   :  { %4047 = vtanh.f32 %v900_v5  ;;  %v999_v27 = vrot.slane %v900_v5, 6 }
0x103d   :  { %v4048_v6 = vpop.eup %4047 }
0x103e   :  { %903 = vrot.lane.b32.xlu0 %v4048_v6, %s4462_s19 }
0x10b0   :  { %v904_v7 = vpop.permute.xlu0 %903 }
0x10b1   :  { %v4810_v9 = vmul.f32 %v4046_v62, %v904_v7  ;;  %v3861_v62 = vpack.c.bf16 %v1145_v60, %v1144_v58 }
0x10b3   :  { %v912_v10 = vrot.slane %v4810_v9, 2 }
0x10b5   :  { %913 = vrot.lane.b32.xlu1 %v912_v10, %s4463_s3  ;;  %v3304_v10 = vld [vmem:[%s5176_s6] ss:$0 sm:$0xff] }
0x1127   :  { %v914_v13 = vpop.permute.xlu1 %913 }
0x1128   :  { %3572 = vmatmul.mubr.msk.f32.vlgmr.msra.gmra.mrb[6].mxu1 %vm258_vm3, %v914_v13 }
0x1129   :  { %3860 = vmatpush3.bf16.msra.mxu1 %v3857_v55 }
0x112a   :  { %3862 = vmatprep.subr.bf16.mxu1 %v3861_v62 }
0x112d   :  { %3864 = vmatpush3.bf16.msra.mxu1 %v3861_v62 }
0x112e   :  { %3871 = vmatprep.subr.bf16.mxu1 %v4459_v0 }
0x11fb   :  { %v983_v14 = vpop.f32.mrb[6].mxu1 }
0x11fc   :  { %v988_v16 = vrot.slane %v983_v14, 4  ;;  %v3573_v18 = vpop.f32.mrb[7].mxu1 }
0x11fe   :  { %v990_v19 = vadd.f32 %v988_v16, %v4732_v15 }
0x1200   :  { %4049 = vtanh.f32 %v990_v19  ;;  %v3301_v21 = vmul.f32 -1.442695, %v990_v19 }
0x1202   :  { %4051 = vpow2.f32 %v3301_v21 }
0x120a   :  { %v4050_v20 = vpop.eup %4049 }
0x120b   :  { %1003 = vrot.lane.b32.xlu0 %v4050_v20, %s4462_s19 }
0x120c   :  { %v4052_v22 = vpop.eup %4051 }
0x120d   :  { %v994_v23 = vadd.f32 1.0, %v4052_v22 }
0x120f   :  { %4053 = vrcp.f32 %v994_v23 }
0x1219   :  { %v4054_v24 = vpop.eup %4053 }
0x121a   :  { %v1001_v28 = vmul.f32 %v4054_v24, %v999_v27 }
0x127d   :  { %v1004_v25 = vpop.permute.xlu0 %1003 }
0x127e   :  { %v1006_v26 = vmul.f32 %v4054_v24, %v1004_v25 }
0x1280   :  { %1008 = vrot.lane.b32.xlu1 %v1006_v26, %s4462_s19 }
0x12f2   :  { %v1009_v29 = vpop.permute.xlu1 %1008 }
0x12f3   :  { %v1011_v30 = vadd.f32 %v1009_v29, %v1001_v28 }
0x12f5   :  { %4055 = vtanh.f32 %v1011_v30 }
0x12ff   :  { %v4056_v31 = vpop.eup %4055 }
0x1300   :  { %1014 = vrot.lane.b32.xlu0 %v4056_v31, %s4462_s19 }
0x1372   :  { %v1015_v17 = vpop.permute.xlu0 %1014 }
0x1373   :  { %v1017_v32 = vmul.f32 %v4054_v24, %v1015_v17 }
0x1375   :  { %v1023_v34 = vrot.slane %v1017_v32, 4 }
0x1377   :  { %1024 = vrot.lane.b32.xlu1 %v1023_v34, %s4463_s3 }
0x13e9   :  { %v1025_v35 = vpop.permute.xlu1 %1024 }
0x13ea   :  { %3583 = vmatmul.mubr.msk.f32.vlgmr.msra.gmra.mrb[8].mxu0 %vm258_vm3, %v1025_v35 }
0x13eb   :  { %3604 = vmatprep.mubr.msk.f32.mxu0 %vm4460_vm0, %v4461_v1  ;;  %3867 = vmatpush3.bf16.msra.mxu0 %v4842_v59 }
0x13ec   :  { %3868 = vmatprep.subr.bf16.mxu0 %v4459_v0 }
0x14bd   :  { %v1094_v36 = vpop.f32.mrb[8].mxu0 }
0x14be   :  { %v1099_v37 = vrot.slane %v1094_v36, 2  ;;  %v3584_v38 = vpop.f32.mrb[9].mxu0 }
0x14c0   :  { %v1101_v39 = vadd.f32 %v1099_v37, %v4732_v15  ;;  %v1110_v15 = vrot.slane %v1011_v30, 6 }
0x14c2   :  { %4057 = vtanh.f32 %v1101_v39  ;;  %v3303_v41 = vmul.f32 -1.442695, %v1101_v39 }
0x14c4   :  { %4059 = vpow2.f32 %v3303_v41 }
0x14cc   :  { %v4058_v40 = vpop.eup %4057 }
0x14cd   :  { %1114 = vrot.lane.b32.xlu0 %v4058_v40, %s4462_s19 }
0x14ce   :  { %v4060_v42 = vpop.eup %4059 }
0x14cf   :  { %v1105_v43 = vadd.f32 1.0, %v4060_v42 }
0x14d1   :  { %4061 = vrcp.f32 %v1105_v43 }
0x14db   :  { %v4062_v44 = vpop.eup %4061 }
0x14dc   :  { %v1112_v47 = vmul.f32 %v4062_v44, %v1110_v15 }
0x153f   :  { %v1115_v45 = vpop.permute.xlu0 %1114 }
0x1540   :  { %v1117_v46 = vmul.f32 %v4062_v44, %v1115_v45 }
0x1542   :  { %1119 = vrot.lane.b32.xlu1 %v1117_v46, %s4462_s19 }
0x1546   :  { %467 = vrot.lane.b32.xlu1 %v4753_v52, %s4463_s3 }
0x154a   :  { %691 = vrot.lane.b32.xlu1 %v4783_v33, %s4463_s3 }
0x154e   :  { %1019 = vrot.lane.b32.xlu1 %v1017_v32, %s4463_s3 }
0x15b4   :  { %v1120_v48 = vpop.permute.xlu1 %1119 }
0x15b5   :  { %v4831_v49 = vadd.f32 %v1120_v48, %v1112_v47 }
0x15b7   :  { %4063 = vtanh.f32 %v4831_v49 }
0x15b8   :  { %v468_v50 = vpop.permute.xlu1 %467 }
0x15b9   :  { %471 = vst.msk [vmem:[#allocation2] sm:$0xc] %vm470_vm4, %v468_v50 }
0x15bc   :  { %v692_v51 = vpop.permute.xlu1 %691 }
0x15bd   :  { %695 = vst.msk [vmem:[#allocation2] sm:$0xc0] %vm694_vm5, %v692_v51 }
0x15c0   :  { %v1020_v52 = vpop.permute.xlu1 %1019 }
0x15c1   :  { %v4064_v33 = vpop.eup %4063  ;;  %1022 = vst.msk [vmem:[#allocation2 + $0x8] sm:$0x30] %vm582_vm6, %v1020_v52 }
0x15c2   :  { %1125 = vrot.lane.b32.xlu0 %v4064_v33, %s4462_s19 }
0x15c6   :  { %579 = vrot.lane.b32.xlu0 %v4768_v11, %s4463_s3  ;;  %v4845_v11 = vpack.c.bf16 %v1237_v61, %v1236_v8 }
0x15c8   :  { %3870 = vmatpush3.bf16.msra.mxu0 %v4845_v11 }
0x15c9   :  { %3877 = vmatprep.subr.bf16.mxu0 %v4459_v0 }
0x15ca   :  { %908 = vrot.lane.b32.xlu0 %v4810_v9, %s4463_s3 }
0x15cb   :  { %3605 = vmatmul.mubr.f32.vlgmr.msra.gmra.mrb[10].mxu0 %v4461_v1 }
0x15cc   :  { %3879 = vmatpush3.bf16.msra.mxu0 %v4842_v59  ;;  %3626 = vmatprep.mubr.msk.f32.mxu0 %vm4460_vm0, %v4461_v1 }
0x15cd   :  { %3880 = vmatprep.subr.bf16.mxu0 %v4459_v0 }
0x15d0   :  { %3882 = vmatpush3.bf16.msra.mxu0 %v4845_v11 }
0x15d1   :  { %3889 = vmatprep.subr.bf16.mxu0 %v4459_v0 }
0x1634   :  { %v1126_v63 = vpop.permute.xlu0 %1125 }
0x1635   :  { %v1128_v2 = vmul.f32 %v4062_v44, %v1126_v63 }
0x1637   :  { %1130 = vrot.lane.b32.xlu0 %v1128_v2, %s4463_s3 }
0x1638   :  { %v580_v12 = vpop.permute.xlu0 %579 }
0x1639   :  { %583 = vst.msk [vmem:[#allocation2] sm:$0x30] %vm582_vm6, %v580_v12 }
0x163c   :  { %v909_v3 = vpop.permute.xlu0 %908 }
0x163d   :  { %911 = vst.msk [vmem:[#allocation2 + $0x8] sm:$0xc] %vm470_vm4, %v909_v3 }
0x1640   :  { %v1140_v4 = vld [vmem:[#allocation2] sm:$0xff] }
0x1641   :  { %3593 = vmatprep.mubr.msk.f32.mxu1 %vm258_vm3, %v1140_v4 }
0x169e   :  { %v1304_v7 = vpop.f32.mrb[10].mxu0 }
0x169f   :  { %v3606_v9 = vpop.f32.mrb[11].mxu0 }
0x16a9   :  { %v1131_v5 = vpop.permute.xlu0 %1130 }
0x16aa   :  { %1133 = vst.msk [vmem:[#allocation2 + $0x8] sm:$0xc0] %vm694_vm5, %v1131_v5  ;;  %1134 = vst.msk [vmem:[#allocation18 - $0x6] sm:$0xc0] %vm694_vm5, %v1131_v5 }
0x16b1   :  { %v1141_v6 = vld [vmem:[#allocation2 + $0x8] sm:$0xff] }
0x16b2   :  { %3594 = vmatmul.mubr.msk.f32.vlgmr.msra.gmra.mrb[8].mxu1 %vm258_vm3, %v1141_v6 }
0x16b3   :  { %3873 = vmatpush3.bf16.msra.mxu1 %v4842_v59  ;;  %3615 = vmatprep.mubr.msk.f32.mxu1 %vm4460_vm0, %v4461_v1 }
0x16b4   :  { %3874 = vmatprep.subr.bf16.mxu1 %v4459_v0 }
0x16b7   :  { %3876 = vmatpush3.bf16.msra.mxu1 %v4845_v11 }
0x16b8   :  { %3883 = vmatprep.subr.bf16.mxu1 %v4459_v0 }
0x1785   :  { %v3595_v13 = vpop.f32.mrb[8].mxu1 }
0x1786   :  { %v4874_v14 = vadd.f32 %v3595_v13, %v3304_v10  ;;  %v1225_v16 = vpop.f32.mrb[9].mxu1 }
0x1787   :  { %v4876_v18 = vadd.f32 %v3304_v10, %v1225_v16 }
0x1789   :  { %v1308_v19 = vadd.f32 %v1304_v7, %v4876_v18 }
0x178b   :  { %4065 = vtanh.f32 %v1308_v19  ;;  %v3307_v21 = vmul.f32 -1.442695, %v1308_v19 }
0x178d   :  { %4067 = vpow2.f32 %v3307_v21 }
0x1795   :  { %v4066_v20 = vpop.eup %4065 }
0x1796   :  { %1318 = vrot.lane.b32.xlu1 %v4066_v20, %s4462_s19 }
0x1797   :  { %v4068_v22 = vpop.eup %4067 }
0x1798   :  { %v1312_v23 = vadd.f32 1.0, %v4068_v22 }
0x179a   :  { %4069 = vrcp.f32 %v1312_v23 }
0x17a4   :  { %v4070_v24 = vpop.eup %4069 }
0x17a5   :  { %v1316_v27 = vmul.f32 0.0, %v4070_v24 }
0x1808   :  { %v1319_v25 = vpop.permute.xlu1 %1318 }
0x1809   :  { %v1321_v26 = vmul.f32 %v4070_v24, %v1319_v25 }
0x180b   :  { %1323 = vrot.lane.b32.xlu0 %v1321_v26, %s4462_s19 }
0x187d   :  { %v1324_v28 = vpop.permute.xlu0 %1323 }
0x187e   :  { %v1326_v29 = vadd.f32 %v1324_v28, %v1316_v27 }
0x1880   :  { %4071 = vtanh.f32 %v1326_v29  ;;  %v1422_v45 = vrot.slane %v1326_v29, 6 }
0x188a   :  { %v4072_v30 = vpop.eup %4071 }
0x188b   :  { %1329 = vrot.lane.b32.xlu1 %v4072_v30, %s4462_s19 }
0x18fd   :  { %v1330_v31 = vpop.permute.xlu1 %1329 }
0x18fe   :  { %v1332_v17 = vmul.f32 %v4070_v24, %v1330_v31 }
0x1900   :  { %1334 = vrot.lane.b32.xlu0 %v1332_v17, %s4463_s3 }
0x1972   :  { %v1335_v32 = vpop.permute.xlu0 %1334 }
0x1973   :  { %1337 = vst.msk [vmem:[#allocation2] sm:$0x3] %vm361_vm2, %v1335_v32  ;;  %3616 = vmatmul.mubr.msk.f32.vlgmr.msra.gmra.mrb[10].mxu1 %vm258_vm3, %v1335_v32 }
0x1974   :  { %3885 = vmatpush3.bf16.msra.mxu1 %v4842_v59  ;;  %3637 = vmatprep.mubr.msk.f32.mxu1 %vm4460_vm0, %v4461_v1 }
0x1975   :  { %3886 = vmatprep.subr.bf16.mxu1 %v4459_v0 }
0x1978   :  { %3888 = vmatpush3.bf16.msra.mxu1 %v4845_v11 }
0x1979   :  { %3895 = vmatprep.subr.bf16.mxu1 %v4459_v0 }
0x1a46   :  { %v1406_v34 = vpop.f32.mrb[10].mxu1 }
0x1a47   :  { %v1411_v35 = vrot.slane %v1406_v34, 6  ;;  %v3617_v36 = vpop.f32.mrb[11].mxu1 }
0x1a49   :  { %v1413_v37 = vadd.f32 %v1411_v35, %v4876_v18 }
0x1a4b   :  { %4073 = vtanh.f32 %v1413_v37  ;;  %v3309_v39 = vmul.f32 -1.442695, %v1413_v37 }
0x1a4d   :  { %4075 = vpow2.f32 %v3309_v39 }
0x1a55   :  { %v4074_v38 = vpop.eup %4073 }
0x1a56   :  { %1426 = vrot.lane.b32.xlu1 %v4074_v38, %s4462_s19 }
0x1a57   :  { %v4076_v40 = vpop.eup %4075 }
0x1a58   :  { %v1417_v41 = vadd.f32 1.0, %v4076_v40 }
0x1a5a   :  { %4077 = vrcp.f32 %v1417_v41 }
0x1a64   :  { %v4078_v42 = vpop.eup %4077 }
0x1a65   :  { %v1424_v46 = vmul.f32 %v4078_v42, %v1422_v45 }
0x1ac8   :  { %v1427_v43 = vpop.permute.xlu1 %1426 }
0x1ac9   :  { %v1429_v44 = vmul.f32 %v4078_v42, %v1427_v43 }
0x1acb   :  { %1431 = vrot.lane.b32.xlu0 %v1429_v44, %s4462_s19 }
0x1b3d   :  { %v1432_v15 = vpop.permute.xlu0 %1431 }
0x1b3e   :  { %v1434_v47 = vadd.f32 %v1432_v15, %v1424_v46 }
0x1b40   :  { %4079 = vtanh.f32 %v1434_v47  ;;  %v1533_v2 = vrot.slane %v1434_v47, 6 }
0x1b4a   :  { %v4080_v48 = vpop.eup %4079 }
0x1b4b   :  { %1437 = vrot.lane.b32.xlu1 %v4080_v48, %s4462_s19 }
0x1bbd   :  { %v1438_v50 = vpop.permute.xlu1 %1437 }
0x1bbe   :  { %v4895_v51 = vmul.f32 %v4078_v42, %v1438_v50 }
0x1bc0   :  { %v1446_v52 = vrot.slane %v4895_v51, 2 }
0x1bc2   :  { %1447 = vrot.lane.b32.xlu0 %v1446_v52, %s4463_s3 }
0x1c34   :  { %v1448_v33 = vpop.permute.xlu0 %1447 }
0x1c35   :  { %3627 = vmatmul.mubr.msk.f32.vlgmr.msra.gmra.mrb[12].mxu0 %vm258_vm3, %v1448_v33 }
0x1c36   :  { %3891 = vmatpush3.bf16.msra.mxu0 %v4842_v59  ;;  %3648 = vmatprep.mubr.msk.f32.mxu0 %vm4460_vm0, %v4461_v1 }
0x1c37   :  { %3892 = vmatprep.subr.bf16.mxu0 %v4459_v0 }
0x1c3a   :  { %3894 = vmatpush3.bf16.msra.mxu0 %v4845_v11 }
0x1c3b   :  { %3901 = vmatprep.subr.bf16.mxu0 %v4459_v0 }
0x1d08   :  { %v1517_v53 = vpop.f32.mrb[12].mxu0 }
0x1d09   :  { %v1522_v54 = vrot.slane %v1517_v53, 4  ;;  %v3628_v55 = vpop.f32.mrb[13].mxu0 }
0x1d0b   :  { %v1524_v56 = vadd.f32 %v1522_v54, %v4876_v18 }
0x1d0d   :  { %4081 = vtanh.f32 %v1524_v56  ;;  %v3311_v58 = vmul.f32 -1.442695, %v1524_v56 }
0x1d0f   :  { %4083 = vpow2.f32 %v3311_v58 }
0x1d17   :  { %v4082_v57 = vpop.eup %4081 }
0x1d18   :  { %1537 = vrot.lane.b32.xlu1 %v4082_v57, %s4462_s19 }
0x1d19   :  { %v4084_v60 = vpop.eup %4083 }
0x1d1a   :  { %v1528_v8 = vadd.f32 1.0, %v4084_v60 }
0x1d1c   :  { %4085 = vrcp.f32 %v1528_v8 }
0x1d26   :  { %v4086_v61 = vpop.eup %4085 }
0x1d27   :  { %v1535_v12 = vmul.f32 %v4086_v61, %v1533_v2 }
0x1d8a   :  { %v1538_v62 = vpop.permute.xlu1 %1537 }
0x1d8b   :  { %v1540_v63 = vmul.f32 %v4086_v61, %v1538_v62 }
0x1d8d   :  { %1542 = vrot.lane.b32.xlu0 %v1540_v63, %s4462_s19 }
0x1dff   :  { %v1543_v3 = vpop.permute.xlu0 %1542 }
0x1e00   :  { %v1545_v4 = vadd.f32 %v1543_v3, %v1535_v12 }
0x1e02   :  { %4087 = vtanh.f32 %v1545_v4  ;;  %v1644_v28 = vrot.slane %v1545_v4, 6 }
0x1e0c   :  { %v4088_v5 = vpop.eup %4087 }
0x1e0d   :  { %1548 = vrot.lane.b32.xlu1 %v4088_v5, %s4462_s19 }
0x1e7f   :  { %v1549_v6 = vpop.permute.xlu1 %1548 }
0x1e80   :  { %v4910_v7 = vmul.f32 %v4086_v61, %v1549_v6 }
0x1e82   :  { %v1557_v9 = vrot.slane %v4910_v7, 4 }
0x1e84   :  { %1558 = vrot.lane.b32.xlu0 %v1557_v9, %s4463_s3 }
0x1ef6   :  { %v1559_v10 = vpop.permute.xlu0 %1558 }
0x1ef7   :  { %3638 = vmatmul.mubr.msk.f32.vlgmr.msra.gmra.mrb[12].mxu1 %vm258_vm3, %v1559_v10 }
0x1ef8   :  { %3897 = vmatpush3.bf16.msra.mxu1 %v4842_v59  ;;  %3659 = vmatprep.mubr.msk.f32.mxu1 %vm4460_vm0, %v4461_v1 }
0x1ef9   :  { %3898 = vmatprep.subr.bf16.mxu1 %v4459_v0 }
0x1efc   :  { %3900 = vmatpush3.bf16.msra.mxu1 %v4845_v11 }
0x1efd   :  { %3907 = vmatprep.subr.bf16.mxu1 %v4459_v0 }
0x1fca   :  { %v1628_v13 = vpop.f32.mrb[12].mxu1 }
0x1fcb   :  { %v1633_v16 = vrot.slane %v1628_v13, 2  ;;  %v3639_v19 = vpop.f32.mrb[13].mxu1 }
0x1fcd   :  { %v1635_v20 = vadd.f32 %v1633_v16, %v4876_v18 }
0x1fcf   :  { %4089 = vtanh.f32 %v1635_v20  ;;  %v3313_v22 = vmul.f32 -1.442695, %v1635_v20 }
0x1fd1   :  { %4091 = vpow2.f32 %v3313_v22 }
0x1fd9   :  { %v4090_v21 = vpop.eup %4089 }
0x1fda   :  { %1648 = vrot.lane.b32.xlu1 %v4090_v21, %s4462_s19 }
0x1fdb   :  { %v4092_v23 = vpop.eup %4091 }
0x1fdc   :  { %v1639_v24 = vadd.f32 1.0, %v4092_v23 }
0x1fde   :  { %4093 = vrcp.f32 %v1639_v24 }
0x1fe8   :  { %v4094_v25 = vpop.eup %4093 }
0x1fe9   :  { %v1646_v29 = vmul.f32 %v4094_v25, %v1644_v28 }
0x204c   :  { %v1649_v26 = vpop.permute.xlu1 %1648 }
0x204d   :  { %v1651_v27 = vmul.f32 %v4094_v25, %v1649_v26 }
0x204f   :  { %1653 = vrot.lane.b32.xlu0 %v1651_v27, %s4462_s19 }
0x20c1   :  { %v1654_v30 = vpop.permute.xlu0 %1653 }
0x20c2   :  { %v1656_v31 = vadd.f32 %v1654_v30, %v1646_v29 }
0x20c4   :  { %4095 = vtanh.f32 %v1656_v31  ;;  %v1752_v46 = vrot.slane %v1656_v31, 6 }
0x20ce   :  { %v4096_v18 = vpop.eup %4095 }
0x20cf   :  { %1659 = vrot.lane.b32.xlu1 %v4096_v18, %s4462_s19 }
0x2141   :  { %v1660_v17 = vpop.permute.xlu1 %1659 }
0x2142   :  { %v4925_v32 = vmul.f32 %v4094_v25, %v1660_v17 }
0x2144   :  { %v1668_v34 = vrot.slane %v4925_v32, 6 }
0x2146   :  { %1669 = vrot.lane.b32.xlu0 %v1668_v34, %s4463_s3 }
0x21b8   :  { %v1670_v35 = vpop.permute.xlu0 %1669 }
0x21b9   :  { %3649 = vmatmul.mubr.msk.f32.vlgmr.msra.gmra.mrb[14].mxu0 %vm258_vm3, %v1670_v35 }
0x21ba   :  { %3903 = vmatpush3.bf16.msra.mxu0 %v4842_v59  ;;  %3670 = vmatprep.mubr.msk.f32.mxu0 %vm4460_vm0, %v4461_v1 }
0x21bb   :  { %3904 = vmatprep.subr.bf16.mxu0 %v4459_v0 }
0x21be   :  { %3906 = vmatpush3.bf16.msra.mxu0 %v4845_v11 }
0x228c   :  { %v1739_v36 = vpop.f32.mrb[14].mxu0 }
0x228d   :  { %v1743_v37 = vadd.f32 %v1739_v36, %v4874_v14  ;;  %v3650_v38 = vpop.f32.mrb[15].mxu0 }
0x228f   :  { %4097 = vtanh.f32 %v1743_v37  ;;  %v3315_v40 = vmul.f32 -1.442695, %v1743_v37 }
0x2291   :  { %4099 = vpow2.f32 %v3315_v40 }
0x2299   :  { %v4098_v39 = vpop.eup %4097 }
0x229a   :  { %1756 = vrot.lane.b32.xlu1 %v4098_v39, %s4462_s19 }
0x229b   :  { %v4100_v41 = vpop.eup %4099 }
0x229c   :  { %v1747_v42 = vadd.f32 1.0, %v4100_v41 }
0x229e   :  { %4101 = vrcp.f32 %v1747_v42 }
0x22a8   :  { %v4102_v43 = vpop.eup %4101 }
0x22a9   :  { %v1754_v15 = vmul.f32 %v4102_v43, %v1752_v46 }
0x230c   :  { %v1757_v44 = vpop.permute.xlu1 %1756 }
0x230d   :  { %v1759_v45 = vmul.f32 %v4102_v43, %v1757_v44 }
0x230f   :  { %1761 = vrot.lane.b32.xlu0 %v1759_v45, %s4462_s19 }
0x2381   :  { %v1762_v47 = vpop.permute.xlu0 %1761 }
0x2382   :  { %v1764_v48 = vadd.f32 %v1762_v47, %v1754_v15 }
0x2384   :  { %4103 = vtanh.f32 %v1764_v48 }
0x238e   :  { %v4104_v50 = vpop.eup %4103 }
0x238f   :  { %1767 = vrot.lane.b32.xlu1 %v4104_v50, %s4462_s19 }
0x2401   :  { %v1768_v52 = vpop.permute.xlu1 %1767 }
0x2402   :  { %v1770_v33 = vmul.f32 %v4102_v43, %v1768_v52 }
0x2404   :  { %1772 = vrot.lane.b32.xlu0 %v1770_v33, %s4463_s3 }
0x2476   :  { %v1773_v53 = vpop.permute.xlu0 %1772 }
0x2477   :  { %1775 = vst.msk [vmem:[#allocation2 + $0x8] sm:$0x3] %vm361_vm2, %v1773_v53  ;;  %3660 = vmatmul.mubr.msk.f32.vlgmr.msra.gmra.mrb[14].mxu1 %vm258_vm3, %v1773_v53 }
0x2478   :  { %3909 = vmatpush3.bf16.msra.mxu1 %v4842_v59  ;;  %3681 = vmatprep.mubr.msk.f32.mxu1 %vm4460_vm0, %v4461_v1 }
0x2479   :  { %3910 = vmatprep.subr.bf16.mxu1 %v4459_v0 }
0x247c   :  { %3912 = vmatpush3.bf16.msra.mxu1 %v4845_v11  ;;  %v1860_v11 = vrot.slane %v1764_v48, 6 }
0x247d   :  { %3921 = vmatprep.subr.bf16.mxu1 %v4459_v0 }
0x254a   :  { %v1844_v54 = vpop.f32.mrb[14].mxu1 }
0x254b   :  { %v1849_v55 = vrot.slane %v1844_v54, 6  ;;  %v3661_v56 = vpop.f32.mrb[15].mxu1  ;;  %v2117_v54 = vld [vmem:[#allocation12 + $0x8] sm:$0xff] }
0x254c   :  { %v2208_v56 = vld [vmem:[#allocation14] sm:$0xff] }
0x254d   :  { %v1851_v57 = vadd.f32 %v1849_v55, %v4874_v14 }
0x254f   :  { %4105 = vtanh.f32 %v1851_v57  ;;  %v3317_v60 = vmul.f32 -1.442695, %v1851_v57  ;;  %v2209_v57 = vld [vmem:[#allocation14 + $0x8] sm:$0xff] }
0x2551   :  { %4107 = vpow2.f32 %v3317_v60  ;;  %v4984_v60 = vpack.c.bf16 %v2209_v57, %v2208_v56 }
0x2559   :  { %v4106_v58 = vpop.eup %4105 }
0x255a   :  { %1864 = vrot.lane.b32.xlu1 %v4106_v58, %s4462_s19  ;;  %v2118_v58 = vld [vmem:[#allocation12 + $0x10] sm:$0xff] }
0x255b   :  { %v4108_v59 = vpop.eup %4107 }
0x255c   :  { %v1855_v8 = vadd.f32 1.0, %v4108_v59  ;;  %v2119_v59 = vld [vmem:[#allocation12 + $0x18] sm:$0xff] }
0x255e   :  { %4109 = vrcp.f32 %v1855_v8  ;;  %v2210_v8 = vld [vmem:[#allocation14 + $0x10] sm:$0xff] }
0x2568   :  { %v4110_v61 = vpop.eup %4109 }
0x2569   :  { %v1862_v2 = vmul.f32 %v4110_v61, %v1860_v11 }
0x25cc   :  { %v1865_v62 = vpop.permute.xlu1 %1864 }
0x25cd   :  { %v1867_v63 = vmul.f32 %v4110_v61, %v1865_v62  ;;  %v3917_v62 = vpack.c.bf16 %v2119_v59, %v2118_v58 }
0x25cf   :  { %1869 = vrot.lane.b32.xlu0 %v1867_v63, %s4462_s19 }
0x2641   :  { %v1870_v12 = vpop.permute.xlu0 %1869 }
0x2642   :  { %v1872_v3 = vadd.f32 %v1870_v12, %v1862_v2 }
0x2644   :  { %4111 = vtanh.f32 %v1872_v3  ;;  %v1971_v28 = vrot.slane %v1872_v3, 6 }
0x264e   :  { %v4112_v4 = vpop.eup %4111 }
0x264f   :  { %1875 = vrot.lane.b32.xlu1 %v4112_v4, %s4462_s19 }
0x26c1   :  { %v1876_v5 = vpop.permute.xlu1 %1875 }
0x26c2   :  { %v4952_v6 = vmul.f32 %v4110_v61, %v1876_v5  ;;  %v2211_v61 = vld [vmem:[#allocation14 + $0x18] sm:$0xff] }
0x26c4   :  { %v1884_v9 = vrot.slane %v4952_v6, 2 }
0x26c6   :  { %1885 = vrot.lane.b32.xlu0 %v1884_v9, %s4463_s3 }
0x2738   :  { %v1886_v10 = vpop.permute.xlu0 %1885 }
0x2739   :  { %3671 = vmatmul.mubr.msk.f32.vlgmr.msra.gmra.mrb[16].mxu0 %vm258_vm3, %v1886_v10  ;;  %v3322_v10 = vld [vmem:[%s5179_s9] ss:$0 sm:$0xff] }
0x280c   :  { %v1955_v13 = vpop.f32.mrb[16].mxu0 }
0x280d   :  { %v1960_v16 = vrot.slane %v1955_v13, 4  ;;  %v3672_v19 = vpop.f32.mrb[17].mxu0 }
0x280f   :  { %v1962_v20 = vadd.f32 %v1960_v16, %v4874_v14 }
0x2811   :  { %4113 = vtanh.f32 %v1962_v20  ;;  %v3319_v22 = vmul.f32 -1.442695, %v1962_v20 }
0x2813   :  { %4115 = vpow2.f32 %v3319_v22 }
0x281b   :  { %v4114_v21 = vpop.eup %4113 }
0x281c   :  { %1975 = vrot.lane.b32.xlu1 %v4114_v21, %s4462_s19 }
0x281d   :  { %v4116_v23 = vpop.eup %4115 }
0x281e   :  { %v1966_v24 = vadd.f32 1.0, %v4116_v23 }
0x2820   :  { %4117 = vrcp.f32 %v1966_v24 }
0x282a   :  { %v4118_v25 = vpop.eup %4117 }
0x282b   :  { %v1973_v29 = vmul.f32 %v4118_v25, %v1971_v28 }
0x288e   :  { %v1976_v26 = vpop.permute.xlu1 %1975 }
0x288f   :  { %v1978_v27 = vmul.f32 %v4118_v25, %v1976_v26 }
0x2891   :  { %1980 = vrot.lane.b32.xlu0 %v1978_v27, %s4462_s19 }
0x2903   :  { %v1981_v30 = vpop.permute.xlu0 %1980 }
0x2904   :  { %v1983_v31 = vadd.f32 %v1981_v30, %v1973_v29 }
0x2906   :  { %4119 = vtanh.f32 %v1983_v31 }
0x2910   :  { %v4120_v18 = vpop.eup %4119 }
0x2911   :  { %1986 = vrot.lane.b32.xlu1 %v4120_v18, %s4462_s19 }
0x2983   :  { %v1987_v17 = vpop.permute.xlu1 %1986 }
0x2984   :  { %v1989_v34 = vmul.f32 %v4118_v25, %v1987_v17 }
0x2986   :  { %v1995_v35 = vrot.slane %v1989_v34, 4 }
0x2988   :  { %1996 = vrot.lane.b32.xlu0 %v1995_v35, %s4463_s3 }
0x29fa   :  { %v1997_v36 = vpop.permute.xlu0 %1996 }
0x29fb   :  { %3682 = vmatmul.mubr.msk.f32.vlgmr.msra.gmra.mrb[16].mxu1 %vm258_vm3, %v1997_v36 }
0x29fc   :  { %3703 = vmatprep.mubr.msk.f32.mxu1 %vm4460_vm0, %v4461_v1  ;;  %3923 = vmatpush3.bf16.msra.mxu1 %v4984_v60 }
0x29fd   :  { %3924 = vmatprep.subr.bf16.mxu1 %v4459_v0 }
0x2ace   :  { %v2066_v37 = vpop.f32.mrb[16].mxu1 }
0x2acf   :  { %v2071_v38 = vrot.slane %v2066_v37, 2  ;;  %v3683_v39 = vpop.f32.mrb[17].mxu1 }
0x2ad1   :  { %v2073_v40 = vadd.f32 %v2071_v38, %v4874_v14  ;;  %v2082_v14 = vrot.slane %v1983_v31, 6 }
0x2ad3   :  { %4121 = vtanh.f32 %v2073_v40  ;;  %v3321_v42 = vmul.f32 -1.442695, %v2073_v40 }
0x2ad5   :  { %4123 = vpow2.f32 %v3321_v42 }
0x2add   :  { %v4122_v41 = vpop.eup %4121 }
0x2ade   :  { %2086 = vrot.lane.b32.xlu1 %v4122_v41, %s4462_s19 }
0x2adf   :  { %v4124_v43 = vpop.eup %4123 }
0x2ae0   :  { %v2077_v44 = vadd.f32 1.0, %v4124_v43 }
0x2ae2   :  { %4125 = vrcp.f32 %v2077_v44 }
0x2aec   :  { %v4126_v45 = vpop.eup %4125 }
0x2aed   :  { %v2084_v47 = vmul.f32 %v4126_v45, %v2082_v14 }
0x2b50   :  { %v2087_v46 = vpop.permute.xlu1 %2086 }
0x2b51   :  { %v2089_v15 = vmul.f32 %v4126_v45, %v2087_v46 }
0x2b53   :  { %2091 = vrot.lane.b32.xlu0 %v2089_v15, %s4462_s19 }
0x2b57   :  { %1442 = vrot.lane.b32.xlu0 %v4895_v51, %s4463_s3 }
0x2b5b   :  { %1664 = vrot.lane.b32.xlu0 %v4925_v32, %s4463_s3  ;;  %v2116_v32 = vld [vmem:[#allocation12] sm:$0xff] }
0x2b5c   :  { %v3913_v55 = vpack.c.bf16 %v2117_v54, %v2116_v32 }
0x2b5e   :  { %3914 = vmatprep.subr.bf16.mxu0 %v3913_v55 }
0x2b5f   :  { %1991 = vrot.lane.b32.xlu0 %v1989_v34, %s4463_s3  ;;  %3916 = vmatpush3.bf16.msra.mxu0 %v3913_v55 }
0x2b60   :  { %3918 = vmatprep.subr.bf16.mxu0 %v3917_v62 }
0x2b63   :  { %3920 = vmatpush3.bf16.msra.mxu0 %v3917_v62 }
0x2b64   :  { %3927 = vmatprep.subr.bf16.mxu0 %v4459_v0 }
0x2bc5   :  { %v2092_v48 = vpop.permute.xlu0 %2091 }
0x2bc6   :  { %v4973_v50 = vadd.f32 %v2092_v48, %v2084_v47 }
0x2bc8   :  { %4127 = vtanh.f32 %v4973_v50 }
0x2bc9   :  { %v1443_v52 = vpop.permute.xlu0 %1442 }
0x2bca   :  { %1445 = vst.msk [vmem:[#allocation2] sm:$0xc] %vm470_vm4, %v1443_v52 }
0x2bcd   :  { %v1665_v33 = vpop.permute.xlu0 %1664 }
0x2bce   :  { %1667 = vst.msk [vmem:[#allocation2] sm:$0xc0] %vm694_vm5, %v1665_v33 }
0x2bd1   :  { %v1992_v53 = vpop.permute.xlu0 %1991 }
0x2bd2   :  { %v4128_v51 = vpop.eup %4127  ;;  %1994 = vst.msk [vmem:[#allocation2 + $0x8] sm:$0x30] %vm582_vm6, %v1992_v53 }
0x2bd3   :  { %2097 = vrot.lane.b32.xlu1 %v4128_v51, %s4462_s19 }
0x2bd7   :  { %1553 = vrot.lane.b32.xlu1 %v4910_v7, %s4463_s3  ;;  %v4987_v7 = vpack.c.bf16 %v2211_v61, %v2210_v8 }
0x2bd9   :  { %3926 = vmatpush3.bf16.msra.mxu1 %v4987_v7 }
0x2bda   :  { %3933 = vmatprep.subr.bf16.mxu1 %v4459_v0 }
0x2bdb   :  { %1880 = vrot.lane.b32.xlu1 %v4952_v6, %s4463_s3 }
0x2bdc   :  { %3704 = vmatmul.mubr.f32.vlgmr.msra.gmra.mrb[18].mxu1 %v4461_v1 }
0x2bdd   :  { %3935 = vmatpush3.bf16.msra.mxu1 %v4984_v60  ;;  %3725 = vmatprep.mubr.msk.f32.mxu1 %vm4460_vm0, %v4461_v1 }
0x2bde   :  { %3936 = vmatprep.subr.bf16.mxu1 %v4459_v0 }
0x2be1   :  { %3938 = vmatpush3.bf16.msra.mxu1 %v4987_v7 }
0x2be2   :  { %3945 = vmatprep.subr.bf16.mxu1 %v4459_v0 }
0x2c45   :  { %v2098_v63 = vpop.permute.xlu1 %2097 }
0x2c46   :  { %v2100_v11 = vmul.f32 %v4126_v45, %v2098_v63 }
0x2c48   :  { %2102 = vrot.lane.b32.xlu1 %v2100_v11, %s4463_s3 }
0x2c49   :  { %v1554_v2 = vpop.permute.xlu1 %1553 }
0x2c4a   :  { %1556 = vst.msk [vmem:[#allocation2] sm:$0x30] %vm582_vm6, %v1554_v2 }
0x2c4d   :  { %v1881_v12 = vpop.permute.xlu1 %1880 }
0x2c4e   :  { %1883 = vst.msk [vmem:[#allocation2 + $0x8] sm:$0xc] %vm470_vm4, %v1881_v12 }
0x2c51   :  { %v2114_v3 = vld [vmem:[#allocation2] sm:$0xff] }
0x2c52   :  { %3692 = vmatprep.mubr.msk.f32.mxu0 %vm258_vm3, %v2114_v3 }
0x2caf   :  { %v2278_v6 = vpop.f32.mrb[18].mxu1 }
0x2cb0   :  { %v3705_v9 = vpop.f32.mrb[19].mxu1 }
0x2cba   :  { %v2103_v4 = vpop.permute.xlu1 %2102 }
0x2cbb   :  { %2105 = vst.msk [vmem:[#allocation2 + $0x8] sm:$0xc0] %vm694_vm5, %v2103_v4  ;;  %2107 = vst.msk [vmem:[#allocation18 - $0x4] sm:$0xc0] %vm694_vm5, %v2103_v4 }
0x2cc2   :  { %v2115_v5 = vld [vmem:[#allocation2 + $0x8] sm:$0xff] }
0x2cc3   :  { %3693 = vmatmul.mubr.msk.f32.vlgmr.msra.gmra.mrb[18].mxu0 %vm258_vm3, %v2115_v5 }
0x2cc4   :  { %3929 = vmatpush3.bf16.msra.mxu0 %v4984_v60  ;;  %3714 = vmatprep.mubr.msk.f32.mxu0 %vm4460_vm0, %v4461_v1 }
0x2cc5   :  { %3930 = vmatprep.subr.bf16.mxu0 %v4459_v0 }
0x2cc8   :  { %3932 = vmatpush3.bf16.msra.mxu0 %v4987_v7 }
0x2cc9   :  { %3939 = vmatprep.subr.bf16.mxu0 %v4459_v0 }
0x2d96   :  { %v3694_v13 = vpop.f32.mrb[18].mxu0 }
0x2d97   :  { %v5016_v16 = vadd.f32 %v3694_v13, %v3322_v10  ;;  %v2199_v19 = vpop.f32.mrb[19].mxu0 }
0x2d98   :  { %v5018_v20 = vadd.f32 %v3322_v10, %v2199_v19 }
0x2d9a   :  { %v2282_v21 = vadd.f32 %v2278_v6, %v5018_v20 }
0x2d9c   :  { %4129 = vtanh.f32 %v2282_v21  ;;  %v3325_v23 = vmul.f32 -1.442695, %v2282_v21 }
0x2d9e   :  { %4131 = vpow2.f32 %v3325_v23 }
0x2da6   :  { %v4130_v22 = vpop.eup %4129 }
0x2da7   :  { %2292 = vrot.lane.b32.xlu0 %v4130_v22, %s4462_s19 }
0x2da8   :  { %v4132_v24 = vpop.eup %4131 }
0x2da9   :  { %v2286_v25 = vadd.f32 1.0, %v4132_v24 }
0x2dab   :  { %4133 = vrcp.f32 %v2286_v25 }
0x2db5   :  { %v4134_v26 = vpop.eup %4133 }
0x2db6   :  { %v2290_v29 = vmul.f32 0.0, %v4134_v26 }
0x2e19   :  { %v2293_v27 = vpop.permute.xlu0 %2292 }
0x2e1a   :  { %v2295_v28 = vmul.f32 %v4134_v26, %v2293_v27 }
0x2e1c   :  { %2297 = vrot.lane.b32.xlu1 %v2295_v28, %s4462_s19 }
0x2e8e   :  { %v2298_v30 = vpop.permute.xlu1 %2297 }
0x2e8f   :  { %v2300_v31 = vadd.f32 %v2298_v30, %v2290_v29 }
0x2e91   :  { %4135 = vtanh.f32 %v2300_v31  ;;  %v2394_v15 = vrot.slane %v2300_v31, 6 }
0x2e9b   :  { %v4136_v18 = vpop.eup %4135 }
0x2e9c   :  { %2303 = vrot.lane.b32.xlu0 %v4136_v18, %s4462_s19 }
0x2f0e   :  { %v2304_v17 = vpop.permute.xlu0 %2303 }
0x2f0f   :  { %v2306_v34 = vmul.f32 %v4134_v26, %v2304_v17 }
0x2f11   :  { %2308 = vrot.lane.b32.xlu1 %v2306_v34, %s4463_s3 }
0x2f83   :  { %v2309_v35 = vpop.permute.xlu1 %2308 }
0x2f84   :  { %3715 = vmatmul.mubr.msk.f32.vlgmr.msra.gmra.mrb[20].mxu0 %vm258_vm3, %v2309_v35 }
0x2f85   :  { %3941 = vmatpush3.bf16.msra.mxu0 %v4984_v60  ;;  %3736 = vmatprep.mubr.msk.f32.mxu0 %vm4460_vm0, %v4461_v1 }
0x2f86   :  { %3942 = vmatprep.subr.bf16.mxu0 %v4459_v0 }
0x2f89   :  { %3944 = vmatpush3.bf16.msra.mxu0 %v4987_v7 }
0x2f8a   :  { %3951 = vmatprep.subr.bf16.mxu0 %v4459_v0 }
0x3057   :  { %v2378_v36 = vpop.f32.mrb[20].mxu0 }
0x3058   :  { %v2383_v37 = vrot.slane %v2378_v36, 6  ;;  %v3716_v38 = vpop.f32.mrb[21].mxu0 }
0x305a   :  { %v2385_v39 = vadd.f32 %v2383_v37, %v5018_v20 }
0x305c   :  { %4137 = vtanh.f32 %v2385_v39  ;;  %v3327_v41 = vmul.f32 -1.442695, %v2385_v39 }
0x305e   :  { %4139 = vpow2.f32 %v3327_v41 }
0x3066   :  { %v4138_v40 = vpop.eup %4137 }
0x3067   :  { %2398 = vrot.lane.b32.xlu0 %v4138_v40, %s4462_s19 }
0x3068   :  { %v4140_v42 = vpop.eup %4139 }
0x3069   :  { %v2389_v43 = vadd.f32 1.0, %v4140_v42 }
0x306b   :  { %4141 = vrcp.f32 %v2389_v43 }
0x3075   :  { %v4142_v44 = vpop.eup %4141 }
0x3076   :  { %v2396_v14 = vmul.f32 %v4142_v44, %v2394_v15 }
0x30d9   :  { %v2399_v45 = vpop.permute.xlu0 %2398 }
0x30da   :  { %v2401_v46 = vmul.f32 %v4142_v44, %v2399_v45 }
0x30dc   :  { %2403 = vrot.lane.b32.xlu1 %v2401_v46, %s4462_s19 }
0x314e   :  { %v2404_v47 = vpop.permute.xlu1 %2403 }
0x314f   :  { %v2406_v48 = vadd.f32 %v2404_v47, %v2396_v14 }
0x3151   :  { %4143 = vtanh.f32 %v2406_v48  ;;  %v2501_v2 = vrot.slane %v2406_v48, 6 }
0x315b   :  { %v4144_v52 = vpop.eup %4143 }
0x315c   :  { %2409 = vrot.lane.b32.xlu0 %v4144_v52, %s4462_s19 }
0x31ce   :  { %v2410_v33 = vpop.permute.xlu0 %2409 }
0x31cf   :  { %v2412_v53 = vmul.f32 %v4142_v44, %v2410_v33 }
0x31d1   :  { %v2414_v51 = vrot.slane %v2412_v53, 2 }
0x31d3   :  { %2415 = vrot.lane.b32.xlu1 %v2414_v51, %s4463_s3 }
0x3245   :  { %v2416_v32 = vpop.permute.xlu1 %2415 }
0x3246   :  { %3726 = vmatmul.mubr.msk.f32.vlgmr.msra.gmra.mrb[20].mxu1 %vm258_vm3, %v2416_v32 }
0x3247   :  { %3947 = vmatpush3.bf16.msra.mxu1 %v4984_v60  ;;  %3747 = vmatprep.mubr.msk.f32.mxu1 %vm4460_vm0, %v4461_v1 }
0x3248   :  { %3948 = vmatprep.subr.bf16.mxu1 %v4459_v0 }
0x324b   :  { %3950 = vmatpush3.bf16.msra.mxu1 %v4987_v7 }
0x324c   :  { %3957 = vmatprep.subr.bf16.mxu1 %v4459_v0 }
0x3319   :  { %v2485_v54 = vpop.f32.mrb[20].mxu1 }
0x331a   :  { %v2490_v55 = vrot.slane %v2485_v54, 4  ;;  %v3727_v56 = vpop.f32.mrb[21].mxu1 }
0x331c   :  { %v2492_v57 = vadd.f32 %v2490_v55, %v5018_v20 }
0x331e   :  { %4145 = vtanh.f32 %v2492_v57  ;;  %v3329_v59 = vmul.f32 -1.442695, %v2492_v57 }
0x3320   :  { %4147 = vpow2.f32 %v3329_v59 }
0x3328   :  { %v4146_v58 = vpop.eup %4145 }
0x3329   :  { %2505 = vrot.lane.b32.xlu0 %v4146_v58, %s4462_s19 }
0x332a   :  { %v4148_v8 = vpop.eup %4147 }
0x332b   :  { %v2496_v61 = vadd.f32 1.0, %v4148_v8 }
0x332d   :  { %4149 = vrcp.f32 %v2496_v61 }
0x3337   :  { %v4150_v62 = vpop.eup %4149 }
0x3338   :  { %v2503_v12 = vmul.f32 %v4150_v62, %v2501_v2 }
0x339b   :  { %v2506_v63 = vpop.permute.xlu0 %2505 }
0x339c   :  { %v2508_v11 = vmul.f32 %v4150_v62, %v2506_v63 }
0x339e   :  { %2510 = vrot.lane.b32.xlu1 %v2508_v11, %s4462_s19 }
0x3410   :  { %v2511_v3 = vpop.permute.xlu1 %2510 }
0x3411   :  { %v2513_v4 = vadd.f32 %v2511_v3, %v2503_v12 }
0x3413   :  { %4151 = vtanh.f32 %v2513_v4  ;;  %v2608_v31 = vrot.slane %v2513_v4, 6 }
0x341d   :  { %v4152_v5 = vpop.eup %4151 }
0x341e   :  { %2516 = vrot.lane.b32.xlu0 %v4152_v5, %s4462_s19 }
0x3490   :  { %v2517_v6 = vpop.permute.xlu0 %2516 }
0x3491   :  { %v2519_v9 = vmul.f32 %v4150_v62, %v2517_v6 }
0x3493   :  { %v2521_v10 = vrot.slane %v2519_v9, 4 }
0x3495   :  { %2522 = vrot.lane.b32.xlu1 %v2521_v10, %s4463_s3 }
0x3507   :  { %v2523_v13 = vpop.permute.xlu1 %2522 }
0x3508   :  { %3737 = vmatmul.mubr.msk.f32.vlgmr.msra.gmra.mrb[22].mxu0 %vm258_vm3, %v2523_v13 }
0x3509   :  { %3953 = vmatpush3.bf16.msra.mxu0 %v4984_v60  ;;  %3758 = vmatprep.mubr.msk.f32.mxu0 %vm4460_vm0, %v4461_v1 }
0x350a   :  { %3954 = vmatprep.subr.bf16.mxu0 %v4459_v0 }
0x350d   :  { %3956 = vmatpush3.bf16.msra.mxu0 %v4987_v7 }
0x350e   :  { %3963 = vmatprep.subr.bf16.mxu0 %v4459_v0 }
0x35db   :  { %v2592_v19 = vpop.f32.mrb[22].mxu0 }
0x35dc   :  { %v2597_v21 = vrot.slane %v2592_v19, 2  ;;  %v3738_v22 = vpop.f32.mrb[23].mxu0 }
0x35de   :  { %v2599_v23 = vadd.f32 %v2597_v21, %v5018_v20 }
0x35e0   :  { %4153 = vtanh.f32 %v2599_v23  ;;  %v3331_v25 = vmul.f32 -1.442695, %v2599_v23 }
0x35e2   :  { %4155 = vpow2.f32 %v3331_v25 }
0x35ea   :  { %v4154_v24 = vpop.eup %4153 }
0x35eb   :  { %2612 = vrot.lane.b32.xlu0 %v4154_v24, %s4462_s19 }
0x35ec   :  { %v4156_v26 = vpop.eup %4155 }
0x35ed   :  { %v2603_v27 = vadd.f32 1.0, %v4156_v26 }
0x35ef   :  { %4157 = vrcp.f32 %v2603_v27 }
0x35f9   :  { %v4158_v28 = vpop.eup %4157 }
0x35fa   :  { %v2610_v18 = vmul.f32 %v4158_v28, %v2608_v31 }
0x365d   :  { %v2613_v29 = vpop.permute.xlu0 %2612 }
0x365e   :  { %v2615_v30 = vmul.f32 %v4158_v28, %v2613_v29 }
0x3660   :  { %2617 = vrot.lane.b32.xlu1 %v2615_v30, %s4462_s19 }
0x36d2   :  { %v2618_v17 = vpop.permute.xlu1 %2617 }
0x36d3   :  { %v2620_v34 = vadd.f32 %v2618_v17, %v2610_v18 }
0x36d5   :  { %4159 = vtanh.f32 %v2620_v34  ;;  %v2712_v47 = vrot.slane %v2620_v34, 6 }
0x36df   :  { %v4160_v20 = vpop.eup %4159 }
0x36e0   :  { %2623 = vrot.lane.b32.xlu0 %v4160_v20, %s4462_s19 }
0x3752   :  { %v2624_v35 = vpop.permute.xlu0 %2623 }
0x3753   :  { %v2626_v36 = vmul.f32 %v4158_v28, %v2624_v35 }
0x3755   :  { %v2628_v37 = vrot.slane %v2626_v36, 6 }
0x3757   :  { %2629 = vrot.lane.b32.xlu1 %v2628_v37, %s4463_s3 }
0x37c9   :  { %v2630_v38 = vpop.permute.xlu1 %2629 }
0x37ca   :  { %3748 = vmatmul.mubr.msk.f32.vlgmr.msra.gmra.mrb[22].mxu1 %vm258_vm3, %v2630_v38 }
0x37cb   :  { %3959 = vmatpush3.bf16.msra.mxu1 %v4984_v60  ;;  %3769 = vmatprep.mubr.msk.f32.mxu1 %vm4460_vm0, %v4461_v1 }
0x37cc   :  { %3960 = vmatprep.subr.bf16.mxu1 %v4459_v0 }
0x37cf   :  { %3962 = vmatpush3.bf16.msra.mxu1 %v4987_v7 }
0x37d0   :  { %3969 = vmatprep.subr.bf16.mxu1 %v4459_v0 }
0x389d   :  { %v2699_v39 = vpop.f32.mrb[22].mxu1 }
0x389e   :  { %v2703_v40 = vadd.f32 %v2699_v39, %v5016_v16  ;;  %v3749_v41 = vpop.f32.mrb[23].mxu1 }
0x38a0   :  { %4161 = vtanh.f32 %v2703_v40  ;;  %v3333_v43 = vmul.f32 -1.442695, %v2703_v40 }
0x38a2   :  { %4163 = vpow2.f32 %v3333_v43 }
0x38aa   :  { %v4162_v42 = vpop.eup %4161 }
0x38ab   :  { %2716 = vrot.lane.b32.xlu0 %v4162_v42, %s4462_s19 }
0x38ac   :  { %v4164_v44 = vpop.eup %4163 }
0x38ad   :  { %v2707_v45 = vadd.f32 1.0, %v4164_v44 }
0x38af   :  { %4165 = vrcp.f32 %v2707_v45 }
0x38b9   :  { %v4166_v46 = vpop.eup %4165 }
0x38ba   :  { %v2714_v48 = vmul.f32 %v4166_v46, %v2712_v47 }
0x391d   :  { %v2717_v15 = vpop.permute.xlu0 %2716 }
0x391e   :  { %v2719_v14 = vmul.f32 %v4166_v46, %v2717_v15 }
0x3920   :  { %2721 = vrot.lane.b32.xlu1 %v2719_v14, %s4462_s19 }
0x3992   :  { %v2722_v52 = vpop.permute.xlu1 %2721 }
0x3993   :  { %v2724_v33 = vadd.f32 %v2722_v52, %v2714_v48 }
0x3995   :  { %4167 = vtanh.f32 %v2724_v33 }
0x399f   :  { %v4168_v53 = vpop.eup %4167 }
0x39a0   :  { %2727 = vrot.lane.b32.xlu0 %v4168_v53, %s4462_s19  ;;  %v3064_v53 = vld [vmem:[%s5180_s10 + $0x8] sm:$0xff] }
0x3a12   :  { %v2728_v51 = vpop.permute.xlu0 %2727 }
0x3a13   :  { %v2730_v32 = vmul.f32 %v4166_v46, %v2728_v51  ;;  %v3065_v51 = vld [vmem:[%s5180_s10 + $0x10] sm:$0xff] }
0x3a15   :  { %2732 = vrot.lane.b32.xlu1 %v2730_v32, %s4463_s3 }
0x3a87   :  { %v2733_v54 = vpop.permute.xlu1 %2732 }
0x3a88   :  { %3759 = vmatmul.mubr.msk.f32.vlgmr.msra.gmra.mrb[24].mxu0 %vm258_vm3, %v2733_v54  ;;  %v3066_v54 = vld [vmem:[%s5180_s10 + $0x18] sm:$0xff] }
0x3a89   :  { %3965 = vmatpush3.bf16.msra.mxu0 %v4984_v60  ;;  %3780 = vmatprep.mubr.msk.f32.mxu0 %vm4460_vm0, %v4461_v1 }
0x3a8a   :  { %3966 = vmatprep.subr.bf16.mxu0 %v4459_v0 }
0x3a8d   :  { %3968 = vmatpush3.bf16.msra.mxu0 %v4987_v7  ;;  %v2818_v7 = vrot.slane %v2724_v33, 6  ;;  %v3063_v33 = vld [vmem:[%s5180_s10] sm:$0xff] }
0x3a8e   :  { %3975 = vmatprep.subr.bf16.mxu0 %v4459_v0  ;;  %v3970_v32 = vpack.c.bf16 %v3064_v53, %v3063_v33 }
0x3b5b   :  { %v2802_v55 = vpop.f32.mrb[24].mxu0 }
0x3b5c   :  { %v2807_v56 = vrot.slane %v2802_v55, 6  ;;  %v3760_v57 = vpop.f32.mrb[25].mxu0  ;;  %v3973_v55 = vpack.c.bf16 %v3066_v54, %v3065_v51 }
0x3b5d   :  { %v3150_v57 = vld [vmem:[#allocation15] sm:$0xff] }
0x3b5e   :  { %v2809_v58 = vadd.f32 %v2807_v56, %v5016_v16 }
0x3b60   :  { %4169 = vtanh.f32 %v2809_v58  ;;  %v3335_v8 = vmul.f32 -1.442695, %v2809_v58  ;;  %v3151_v58 = vld [vmem:[#allocation15 + $0x8] sm:$0xff] }
0x3b62   :  { %4171 = vpow2.f32 %v3335_v8  ;;  %v3976_v8 = vpack.c.bf16 %v3151_v58, %v3150_v57 }
0x3b6a   :  { %v4170_v59 = vpop.eup %4169 }
0x3b6b   :  { %2822 = vrot.lane.b32.xlu0 %v4170_v59, %s4462_s19 }
0x3b6c   :  { %v4172_v60 = vpop.eup %4171 }
0x3b6d   :  { %v2813_v61 = vadd.f32 1.0, %v4172_v60 }
0x3b6f   :  { %4173 = vrcp.f32 %v2813_v61 }
0x3b79   :  { %v4174_v62 = vpop.eup %4173 }
0x3b7a   :  { %v2820_v2 = vmul.f32 %v4174_v62, %v2818_v7  ;;  %v3152_v7 = vld [vmem:[#allocation15 + $0x10] sm:$0xff] }
0x3bdd   :  { %v2823_v63 = vpop.permute.xlu0 %2822 }
0x3bde   :  { %v2825_v11 = vmul.f32 %v4174_v62, %v2823_v63 }
0x3be0   :  { %2827 = vrot.lane.b32.xlu1 %v2825_v11, %s4462_s19 }
0x3c52   :  { %v2828_v12 = vpop.permute.xlu1 %2827 }
0x3c53   :  { %v2830_v3 = vadd.f32 %v2828_v12, %v2820_v2 }
0x3c55   :  { %4175 = vtanh.f32 %v2830_v3  ;;  %v2925_v30 = vrot.slane %v2830_v3, 6 }
0x3c5f   :  { %v4176_v4 = vpop.eup %4175 }
0x3c60   :  { %2833 = vrot.lane.b32.xlu0 %v4176_v4, %s4462_s19 }
0x3cd2   :  { %v2834_v5 = vpop.permute.xlu0 %2833 }
0x3cd3   :  { %v2836_v6 = vmul.f32 %v4174_v62, %v2834_v5 }
0x3cd5   :  { %v2838_v9 = vrot.slane %v2836_v6, 2 }
0x3cd7   :  { %2839 = vrot.lane.b32.xlu1 %v2838_v9, %s4463_s3 }
0x3d49   :  { %v2840_v10 = vpop.permute.xlu1 %2839 }
0x3d4a   :  { %3770 = vmatmul.mubr.msk.f32.vlgmr.msra.gmra.mrb[24].mxu1 %vm258_vm3, %v2840_v10 }
0x3d4b   :  { %3791 = vmatprep.mubr.msk.f32.mxu1 %vm4460_vm0, %v4461_v1  ;;  %3971 = vmatpush3.bf16.msra.mxu1 %v3970_v32 }
0x3d4c   :  { %3972 = vmatprep.subr.bf16.mxu1 %v4459_v0 }
0x3d4f   :  { %3974 = vmatpush3.bf16.msra.mxu1 %v3973_v55 }
0x3e1d   :  { %v2909_v13 = vpop.f32.mrb[24].mxu1 }
0x3e1e   :  { %v2914_v19 = vrot.slane %v2909_v13, 4  ;;  %v3771_v21 = vpop.f32.mrb[25].mxu1 }
0x3e20   :  { %v2916_v22 = vadd.f32 %v2914_v19, %v5016_v16 }
0x3e22   :  { %4177 = vtanh.f32 %v2916_v22  ;;  %v3337_v24 = vmul.f32 -1.442695, %v2916_v22 }
0x3e24   :  { %4179 = vpow2.f32 %v3337_v24 }
0x3e2c   :  { %v4178_v23 = vpop.eup %4177 }
0x3e2d   :  { %2929 = vrot.lane.b32.xlu0 %v4178_v23, %s4462_s19 }
0x3e2e   :  { %v4180_v25 = vpop.eup %4179 }
0x3e2f   :  { %v2920_v26 = vadd.f32 1.0, %v4180_v25 }
0x3e31   :  { %4181 = vrcp.f32 %v2920_v26 }
0x3e3b   :  { %v4182_v27 = vpop.eup %4181 }
0x3e3c   :  { %v2927_v31 = vmul.f32 %v4182_v27, %v2925_v30 }
0x3e9f   :  { %v2930_v28 = vpop.permute.xlu0 %2929 }
0x3ea0   :  { %v2932_v29 = vmul.f32 %v4182_v27, %v2930_v28 }
0x3ea2   :  { %2934 = vrot.lane.b32.xlu1 %v2932_v29, %s4462_s19 }
0x3f14   :  { %v2935_v18 = vpop.permute.xlu1 %2934 }
0x3f15   :  { %v2937_v17 = vadd.f32 %v2935_v18, %v2927_v31 }
0x3f17   :  { %4183 = vtanh.f32 %v2937_v17 }
0x3f21   :  { %v4184_v34 = vpop.eup %4183 }
0x3f22   :  { %2940 = vrot.lane.b32.xlu0 %v4184_v34, %s4462_s19 }
0x3f94   :  { %v2941_v20 = vpop.permute.xlu0 %2940 }
0x3f95   :  { %v2943_v35 = vmul.f32 %v4182_v27, %v2941_v20 }
0x3f97   :  { %v2945_v36 = vrot.slane %v2943_v35, 4 }
0x3f99   :  { %2946 = vrot.lane.b32.xlu1 %v2945_v36, %s4463_s3 }
0x400b   :  { %v2947_v37 = vpop.permute.xlu1 %2946 }
0x400c   :  { %3781 = vmatmul.mubr.msk.f32.vlgmr.msra.gmra.mrb[26].mxu0 %vm258_vm3, %v2947_v37 }
0x400d   :  { %3802 = vmatprep.mubr.msk.f32.mxu0 %vm4460_vm0, %v4461_v1  ;;  %v3032_v1 = vrot.slane %v2937_v17, 6  ;;  %3977 = vmatpush3.bf16.msra.mxu0 %v3976_v8 }
0x400e   :  { %3978 = vmatprep.subr.bf16.mxu0 %v4459_v0 }
0x40df   :  { %v3016_v38 = vpop.f32.mrb[26].mxu0 }
0x40e0   :  { %v3021_v39 = vrot.slane %v3016_v38, 2  ;;  %v3782_v40 = vpop.f32.mrb[27].mxu0 }
0x40e2   :  { %v3023_v41 = vadd.f32 %v3021_v39, %v5016_v16 }
0x40e4   :  { %4185 = vtanh.f32 %v3023_v41  ;;  %v3339_v43 = vmul.f32 -1.442695, %v3023_v41 }
0x40e6   :  { %4187 = vpow2.f32 %v3339_v43 }
0x40ee   :  { %v4186_v42 = vpop.eup %4185 }
0x40ef   :  { %3036 = vrot.lane.b32.xlu0 %v4186_v42, %s4462_s19 }
0x40f0   :  { %v4188_v44 = vpop.eup %4187 }
0x40f1   :  { %v3027_v45 = vadd.f32 1.0, %v4188_v44 }
0x40f3   :  { %4189 = vrcp.f32 %v3027_v45 }
0x40fd   :  { %v4190_v46 = vpop.eup %4189 }
0x40fe   :  { %v3034_v47 = vmul.f32 %v4190_v46, %v3032_v1 }
0x4161   :  { %v3037_v15 = vpop.permute.xlu0 %3036 }
0x4162   :  { %v3039_v14 = vmul.f32 %v4190_v46, %v3037_v15 }
0x4164   :  { %3041 = vrot.lane.b32.xlu1 %v3039_v14, %s4462_s19 }
0x41d6   :  { %v3042_v48 = vpop.permute.xlu1 %3041 }
0x41d7   :  { %v3044_v52 = vadd.f32 %v3042_v48, %v3034_v47 }
0x41d9   :  { %4191 = vtanh.f32 %v3044_v52 }
0x41e3   :  { %v4192_v16 = vpop.eup %4191 }
0x41e4   :  { %3047 = vrot.lane.b32.xlu0 %v4192_v16, %s4462_s19 }
0x4256   :  { %v3048_v56 = vpop.permute.xlu0 %3047 }
0x4257   :  { %v3050_v59 = vmul.f32 %v4190_v46, %v3048_v56 }
0x4259   :  { %v3074_v60 = vrot.slane %v3050_v59, 6  ;;  %3052 = vrot.lane.b32.xlu0 %v3050_v59, %s4463_s3 }
0x425b   :  { %3075 = vrot.lane.b32.xlu1 %v3074_v60, %s4463_s3 }
0x425d   :  { %2109 = vrot.lane.b32.xlu0 %v4973_v50, %s4464_s26  ;;  %v3153_v50 = vld [vmem:[#allocation15 + $0x18] sm:$0xff] }
0x425e   :  { %v3979_v2 = vpack.c.bf16 %v3153_v50, %v3152_v7 }
0x425f   :  { %1136 = vrot.lane.b32.xlu1 %v4831_v49, %s4464_s26  ;;  %v3340_v49 = vld [vmem:[%s5181_s11] ss:$0 sm:$0xff] }
0x4260   :  { %3980 = vmatpush3.bf16.msra.mxu0 %v3979_v2 }
0x4263   :  { %3058 = vrot.lane.b32.xlu1 %v3044_v52, %s4464_s26 }
0x42cb   :  { %v3053_v61 = vpop.permute.xlu0 %3052 }
0x42cc   :  { %3056 = vst.msk [vmem:[#allocation18 - $0x2] sm:$0xc0] %vm694_vm5, %v3053_v61 }
0x42cd   :  { %v3076_v62 = vpop.permute.xlu1 %3075 }
0x42ce   :  { %3792 = vmatmul.mubr.msk.f32.vlgmr.msra.gmra.mrb[26].mxu1 %vm258_vm3, %v3076_v62 }
0x42cf   :  { %v2110_v63 = vpop.permute.xlu0 %2109 }
0x42d0   :  { %2113 = vst.msk [vmem:[#allocation20 - $0x4] sm:$0xc0] %vm694_vm5, %v2110_v63 }
0x42d1   :  { %v1137_v11 = vpop.permute.xlu1 %1136 }
0x42d2   :  { %1139 = vst.msk [vmem:[#allocation20 - $0x6] sm:$0xc0] %vm694_vm5, %v1137_v11 }
0x42d5   :  { %v3059_v0 = vpop.permute.xlu1 %3058 }
0x42d6   :  { %3062 = vst.msk [vmem:[#allocation20 - $0x2] sm:$0xc0] %vm694_vm5, %v3059_v0 }
0x43a1   :  { %v3145_v12 = vpop.f32.mrb[26].mxu1 }
0x43a2   :  { %v3146_v3 = vadd.f32 %v3340_v49, %v3145_v12  ;;  %v3793_v4 = vpop.f32.mrb[27].mxu1 }
0x43a4   :  { %v3149_v5 = vmax.f32 %v3146_v3, 0.0 }
0x43a6   :  { %3803 = vmatmul.mubr.msk.f32.vlgmr.msra.gmra.mrb[28].mxu0 %vm258_vm3, %v3149_v5 }
0x43a7   :  { %4380 = shalt.err (!%p4377_p12)
}
0x43a8   :  { %s4381_s11 = scalar_lea.hbm %s5185_s15, 96 }
0x43a9   :  { %p4382_p13 = scmp.ne.s32.totalorder %s5185_s15, %s4381_s11  ;;  %p4385_p0 = scmp.lt.u32.totalorder %s4381_s11, %s5185_s15 }
0x43ab   :  { %p4387_p1 = pnand %p4385_p0, %p4382_p13 }
0x43ad   :  { %4390 = shalt.err (!%p4387_p1)
}
0x43ae   :  { %s4466_s3 = smov 2   ;;  %s4467_s6 = smov [#allocation20]  }
0x43af   :  { %3257 = dma.vmem_to_hbm [thread:$0]  %s3252_s27, 96, %s5185_s15, [#allocation19], %s4462_s19, %s4462_s19, %s4466_s3  }
0x43b0   :  { %s3263_s20 = sshll.u32 %s4467_s6, 4  ;;  %s3264_s20 = int_to_ptr.vmem [resolvable:$true] %s3263_s20 }
0x43b1   :  { %s4391_s9 = scalar_lea.vmem %s3264_s20, 96  ;;  %p4396_p3 = scmp.lt.s32.totalorder %s3264_s20, %s3264_s20 }
0x43b2   :  { %p4392_p2 = scmp.ne.s32.totalorder %s3264_s20, %s4391_s9  ;;  %p4397_p4 = scmp.lt.s32.totalorder %s4391_s9, %s4391_s9 }
0x43b4   :  { %p4398_p5 = por %p4397_p4, %p4396_p3 }
0x43b6   :  { %p4399_p6 = pnand %p4398_p5, %p4392_p2 }
0x43b8   :  { %4402 = shalt.err (!%p4399_p6)
}
0x43b9   :  { %s4403_s22 = scalar_lea.hbm %s5186_s16, 96 }
0x43ba   :  { %p4404_p7 = scmp.ne.s32.totalorder %s5186_s16, %s4403_s22  ;;  %p4407_p8 = scmp.lt.u32.totalorder %s4403_s22, %s5186_s16 }
0x43bc   :  { %p4409_p9 = pnand %p4407_p8, %p4404_p7 }
0x43be   :  { %4412 = shalt.err (!%p4409_p9)
}
0x43bf   :  { %3269 = dma.vmem_to_hbm [thread:$0]  %s3264_s20, 96, %s5186_s16, [#allocation19], %s4462_s19, %s4462_s19, %s4466_s3   ;;  %vm3234_vm7 = vcmask 386048  }
0x43c0   :  { %v3342_v6 = vld [vmem:[%s5183_s13] ss:$0 sm:$0xff]  ;;  %s4468_s4 = smov [#allocation17]  }
0x43c1   :  { %s3242_s27 = sshll.u32 %s4468_s4, 4  ;;  %s3243_s27 = int_to_ptr.vmem [resolvable:$true] %s3242_s27 }
0x43c2   :  { %s4413_s29 = scalar_lea.vmem %s3243_s27, 32  ;;  %p4418_p11 = scmp.lt.s32.totalorder %s3243_s27, %s3243_s27 }
0x43c3   :  { %p4414_p10 = scmp.ne.s32.totalorder %s3243_s27, %s4413_s29  ;;  %p4419_p12 = scmp.lt.s32.totalorder %s4413_s29, %s4413_s29 }
0x43c5   :  { %p4420_p13 = por %p4419_p12, %p4418_p11 }
0x43c7   :  { %p4421_p0 = pnand %p4420_p13, %p4414_p10 }
0x4479   :  { %v3230_v9 = vpop.f32.mrb[28].mxu0 }
0x447a   :  { %v3231_v10 = vadd.f32 %v3342_v6, %v3230_v9  ;;  %v3804_v13 = vpop.f32.mrb[29].mxu0 }
0x447c   :  { %3235 = vst.msk [vmem:[#allocation17] sm:$0x3] %vm3234_vm7, %v3231_v10 }
0x447d   :  { %4424 = shalt.err (!%p4421_p0)
}
0x447e   :  { %s4425_s21 = scalar_lea.hbm %s5184_s14, 32 }
0x447f   :  { %p4426_p1 = scmp.ne.s32.totalorder %s5184_s14, %s4425_s21  ;;  %p4429_p2 = scmp.lt.u32.totalorder %s4425_s21, %s5184_s14 }
0x4481   :  { %p4431_p3 = pnand %p4429_p2, %p4426_p1 }
0x4483   :  { %4434 = shalt.err (!%p4431_p3)
}
0x4484   :  { %3245 = dma.vmem_to_hbm [thread:$0]  %s3243_s27, 32, %s5184_s14, [#allocation5]  }
0x4485   :  { %4445 = dma.done.wait [#allocation5], 32  }
0x4486   :  { %4446 = vsyncadd [#allocation5], 4294967264 }
0x4487   :  { %4447 = dma.done.wait [#allocation19], 192  }
0x4488   :  { %4448 = vsyncadd [#allocation19], 4294967104 }
0x4489   :  { %3279 = vsyncpa [#allocation4], 1 }
0x448a   :  { %3280 = vsyncpa [#allocation7], 1 }
0x448b   :  { %3281 = vsyncpa [#allocation10], 1 }
0x448c   :  { %3282 = vsyncpa [#allocation13], 1 }
0x448d   :  { %3283 = vsyncpa [#allocation16], 1 }
0x448e   :  { %3284 = vsyncpa [#allocation5], 1 }
0x448f   :  { %3285 = vsyncpa [#allocation19], 1 }

</bundles_post_ra>
